<compile_context>
chip_gen: v7x
topology: tpu7x:2x2x1
jax: 0.10.0
libtpu: 0.0.40
codegen_flags: <defaults>
</compile_context>

<pallas_src>
import functools

import numpy as np
import jax
import jax.numpy as jnp
from jax.experimental import pallas as pl
from jax.experimental.pallas import tpu as pltpu


# ---------------------------------------------------------------------------
# Fused kernel: conv1 -> relu -> pool -> conv2 -> relu -> pool -> fc1 -> relu -> fc2
# ---------------------------------------------------------------------------
def cnn_fused_kernel(x_ref, w1_ref, b1_ref, w2_ref, b2_ref,
                     wf1_ref, bf1_ref, wf2_ref, bf2_ref, o_ref, *, use_bf16):
    # x_ref  : (TN, L, C1in)        channels-last input tile
    # w1_ref : (3, C1in, C1out)     per-tap conv1 weights   b1_ref : (1, C1out)
    # w2_ref : (3, C2in, C2out)     per-tap conv2 weights   b2_ref : (1, C2out)
    # wf1_ref: (L//4, C2out, 128)   fc1 weights, one (C2out,128) block per position
    # bf1_ref: (1, 128)
    # wf2_ref: (128, 128)           fc2 weights zero-padded from (128, 3)
    # bf2_ref: (1, 128)             fc2 bias zero-padded
    # o_ref  : (TN, 128)            lane-dense logits slab (first 3 cols valid)

    def mm(a, w):
        # MXU matmul; bf16 operands + f32 accumulation when enabled.
        if use_bf16:
            a = a.astype(jnp.bfloat16)
            w = w.astype(jnp.bfloat16)
        return jnp.dot(a, w, preferred_element_type=jnp.float32)

    def conv3_relu(x2d, w_ref, b_ref, lc):
        # x2d: (rows, Cin) with rows in (n, l) order, rows = TN*lc.
        # Conv1d(k=3, pad=1): y[l] = x[l-1] @ w[0] + x[l] @ w[1] + x[l+1] @ w[2].
        # Shifted operands come from a sublane roll of the batch-folded slab;
        # the wrap-around rows land exactly where the padding mask zeroes them,
        # so cross-batch leakage is masked away too.
        rows, _ = x2d.shape
        l_idx = jax.lax.broadcasted_iota(jnp.int32, (rows, 1), 0) % lc
        x_prev = jnp.where(l_idx == 0, 0.0, pltpu.roll(x2d, shift=1, axis=0))
        x_next = jnp.where(l_idx == lc - 1, 0.0,
                           pltpu.roll(x2d, shift=rows - 1, axis=0))
        acc = mm(x_prev, w_ref[0])
        acc += mm(x2d, w_ref[1])
        acc += mm(x_next, w_ref[2])
        return jnp.maximum(acc + b_ref[...], 0.0)        # bias + ReLU in f32

    def pool2(y2d):
        # MaxPool1d(2,2) = max over adjacent row (position) pairs; L is even so
        # pairs never straddle a batch boundary.  Lane (channel) dim untouched.
        r, c = y2d.shape
        return jnp.max(y2d.reshape(r // 2, 2, c), axis=1)

    tn, seq_len, c1in = x_ref.shape
    x2d = x_ref[...].reshape(tn * seq_len, c1in)          # fold batch into MXU rows

    h1 = pool2(conv3_relu(x2d, w1_ref, b1_ref, seq_len))          # (TN*L/2, 32)
    h2 = pool2(conv3_relu(h1, w2_ref, b2_ref, seq_len // 2))      # (TN*L/4, 64)

    # fc1: out[n, :] = sum_l h2[n, l, :] @ wf1_3d[l]  -- accumulating matmuls,
    # no lane concat / sublane->lane relayout of the activations.
    l4 = seq_len // 4
    c2 = h2.shape[1]
    h2 = h2.reshape(tn, l4, c2)
    acc = mm(h2[:, 0, :], wf1_ref[0])
    for l in range(1, l4):
        acc += mm(h2[:, l, :], wf1_ref[l])
    hfc = jnp.maximum(acc + bf1_ref[...], 0.0)                    # (TN, 128)

    # fc2 into a 128-lane slab -> unmasked lane-dense store.
    o_ref[...] = mm(hfc, wf2_ref[...]) + bf2_ref[...]


# ---------------------------------------------------------------------------
# One-time parameter re-layout (pure glue, done once at setup)
# ---------------------------------------------------------------------------
def prepare_params(params, L, out_pad=128):
    w1, b1, w2, b2, wf1, bf1, wf2, bf2 = params
    c1out, c1in, _ = w1.shape
    c2out, c2in, _ = w2.shape
    hidden = wf1.shape[0]
    nclass = wf2.shape[0]
    l4 = L // 4

    # conv weights -> (k, Cin, Cout): w_t[k, c, o] = w[o, c, k] (leading-dim tap
    # index -> aligned slices inside the kernel, no sublane-offset loads).
    w1t = jnp.transpose(w1, (2, 1, 0))                    # (3, 9, 32)
    w2t = jnp.transpose(w2, (2, 1, 0))                    # (3, 32, 64)
    b1r = b1.reshape(1, c1out)
    b2r = b2.reshape(1, c2out)

    # PyTorch flatten order is channel-major: feature = c * l4 + l.
    # Kernel contracts per position l over channels: wf1_3d[l, c, j] = wf1[j, c*l4 + l].
    wf1_3d = jnp.transpose(wf1.reshape(hidden, c2out, l4), (2, 1, 0))  # (l4, 64, 128)
    bf1r = bf1.reshape(1, hidden)

    # fc2 -> (in, out) with the output dim zero-padded to 128 lanes.
    wf2p = jnp.pad(wf2.T, ((0, 0), (0, out_pad - nclass)))
    bf2r = jnp.pad(bf2.reshape(1, nclass), ((0, 0), (0, out_pad - nclass)))

    return (w1t, b1r, w2t, b2r, wf1_3d, bf1r, wf2p, bf2r)


# ---------------------------------------------------------------------------
# Forward wrapper: batch-gridded single pallas_call
# ---------------------------------------------------------------------------
def simple_cnn_forward(x, prep, *, channels_last=True, num_classes=3,
                       block_n=None, use_bf16=True):
    """x: (N, L, Cin) channels-last (preferred) or (N, Cin, L) if channels_last=False."""
    if not channels_last:
        # Compatibility fallback; prefer storing activations channels-last
        # upstream — this transpose is an extra XLA kernel + HBM round trip.
        x = jnp.transpose(x, (0, 2, 1))
    N, L, c1in = x.shape
    assert L % 4 == 0, "L must be divisible by 4 (two MaxPool1d(2) stages)"

    w1t, b1r, w2t, b2r, wf1_3d, bf1r, wf2p, bf2r = prep
    c1out = w1t.shape[2]
    c2in, c2out = w2t.shape[1], w2t.shape[2]
    l4, _, hidden = wf1_3d.shape
    out_pad = wf2p.shape[1]

    # Batch tile: fills the MXU M dim and lets the x DMA double-buffer.
    # Guidance: TN=128 on v5e, TN=256 on v6e/v7x; keep 2*(TN*L*Cin*4B) plus the
    # live intermediates under the scoped VMEM limit (v7x: 32 MiB default / 64 MiB
    # physical — a tile sized for v6e's 128 MiB will not carry over).
    if block_n is None:
        block_n = 256
    tn = min(block_n, N)
    pad = (-N) % tn
    if pad:
        x = jnp.pad(x, ((0, pad), (0, 0), (0, 0)))
    n_pad = N + pad
    grid = (n_pad // tn,)

    flops = 2 * n_pad * (L * 3 * c1in * c1out
                         + (L // 2) * 3 * c2in * c2out
                         + l4 * c2out * hidden
                         + hidden * out_pad)
    bytes_accessed = 4 * (x.size + sum(int(p.size) for p in prep) + n_pad * out_pad)

    kernel = functools.partial(cnn_fused_kernel, use_bf16=use_bf16)
    logits_pad = pl.pallas_call(
        kernel,
        out_shape=jax.ShapeDtypeStruct((n_pad, out_pad), jnp.float32),
        grid=grid,
        in_specs=[
            pl.BlockSpec((tn, L, c1in), lambda i: (i, 0, 0)),       # x: batch-blocked
            pl.BlockSpec((3, c1in, c1out), lambda i: (0, 0, 0)),    # weights stay
            pl.BlockSpec((1, c1out), lambda i: (0, 0)),             #   VMEM-resident
            pl.BlockSpec((3, c2in, c2out), lambda i: (0, 0, 0)),    #   (constant
            pl.BlockSpec((1, c2out), lambda i: (0, 0)),             #    index_map)
            pl.BlockSpec((l4, c2out, hidden), lambda i: (0, 0, 0)),
            pl.BlockSpec((1, hidden), lambda i: (0, 0)),
            pl.BlockSpec((hidden, out_pad), lambda i: (0, 0)),
            pl.BlockSpec((1, out_pad), lambda i: (0, 0)),
        ],
        out_specs=pl.BlockSpec((tn, out_pad), lambda i: (i, 0)),
        compiler_params=pltpu.CompilerParams(
            dimension_semantics=("parallel",),      # megacore sharding on v7x
            vmem_limit_bytes=32 * 1024 * 1024),
        cost_estimate=pl.CostEstimate(flops=flops, transcendentals=0,
                                      bytes_accessed=bytes_accessed),
    )(x, w1t, b1r, w2t, b2r, wf1_3d, bf1r, wf2p, bf2r)

    return logits_pad[:N, :num_classes]


# ---------------------------------------------------------------------------
# Pure-JAX reference (PyTorch semantics, original parameter layout)
# ---------------------------------------------------------------------------
def ref_forward(x, params):
    w1, b1, w2, b2, wf1, bf1, wf2, bf2 = params

    def conv1d(x, w, b):
        y = jax.lax.conv_general_dilated(
            x, w, window_strides=(1,), padding=((1, 1),),
            dimension_numbers=("NCH", "OIH", "NCH"))
        return y + b[None, :, None]

    def pool(x):
        return x.reshape(x.shape[0], x.shape[1], x.shape[2] // 2, 2).max(-1)

    h = pool(jax.nn.relu(conv1d(x, w1, b1)))
    h = pool(jax.nn.relu(conv1d(h, w2, b2)))
    h = h.reshape(h.shape[0], -1)                 # torch.flatten(x, 1): (N, C*L//4)
    h = jax.nn.relu(h @ wf1.T + bf1)
    return h @ wf2.T + bf2


# ---------------------------------------------------------------------------
# Main
# ---------------------------------------------------------------------------
if __name__ == "__main__":
    N, C_IN, L = 16, 9, 16          # fc1 in_features = 64 * (L // 4) = 256

    key = jax.random.PRNGKey(0)
    ks = jax.random.split(key, 9)

    # Deterministic synthetic parameters (shapes from SimpleCNN.__init__).
    w1 = 0.1 * jax.random.normal(ks[0], (32, 9, 3), jnp.float32)
    b1 = 0.1 * jax.random.normal(ks[1], (32,), jnp.float32)
    w2 = 0.1 * jax.random.normal(ks[2], (64, 32, 3), jnp.float32)
    b2 = 0.1 * jax.random.normal(ks[3], (64,), jnp.float32)
    wf1 = 0.1 * jax.random.normal(ks[4], (128, 64 * (L // 4)), jnp.float32)  # LazyLinear(128)
    bf1 = 0.1 * jax.random.normal(ks[5], (128,), jnp.float32)
    wf2 = 0.1 * jax.random.normal(ks[6], (3, 128), jnp.float32)
    bf2 = 0.1 * jax.random.normal(ks[7], (3,), jnp.float32)
    params = (w1, b1, w2, b2, wf1, bf1, wf2, bf2)

    x_ncl = jax.random.normal(ks[8], (N, C_IN, L), jnp.float32)   # PyTorch layout
    x_nlc = jnp.transpose(x_ncl, (0, 2, 1))   # one-time data prep: channels-last

    prep = prepare_params(params, L)          # one-time parameter re-layout

    # block_n=8 -> grid=(2,), exercising the batch grid at this tiny size.
    fwd_f32 = jax.jit(lambda xx: simple_cnn_forward(xx, prep, block_n=8, use_bf16=False))
    fwd_bf16 = jax.jit(lambda xx: simple_cnn_forward(xx, prep, block_n=8, use_bf16=True))

    ref = jax.block_until_ready(ref_forward(x_ncl, params))

    # Strict check on the f32-operand path (exercises layout / conv-tap logic).
    out_f32 = jax.block_until_ready(fwd_f32(x_nlc))
    assert out_f32.shape == (N, 3), out_f32.shape
    np.testing.assert_allclose(np.asarray(out_f32), np.asarray(ref), rtol=1e-4, atol=1e-4)

    # Looser check on the bf16-operand / f32-accumulation fast path.
    out_bf16 = jax.block_until_ready(fwd_bf16(x_nlc))
    assert out_bf16.shape == (N, 3), out_bf16.shape
    np.testing.assert_allclose(np.asarray(out_bf16), np.asarray(ref), rtol=5e-2, atol=5e-2)

    print("KERNEL_OK")
</pallas_src>

<mosaic_0001>
module attributes {stable_mosaic.version = 11 : i64} {
  func.func @cnn_fused_kernel(%arg0: i32, %arg1: memref<8x16x9xf32, #tpu.memory_space<vmem>>, %arg2: memref<3x9x32xf32, #tpu.memory_space<vmem>>, %arg3: memref<1x32xf32, #tpu.memory_space<vmem>>, %arg4: memref<3x32x64xf32, #tpu.memory_space<vmem>>, %arg5: memref<1x64xf32, #tpu.memory_space<vmem>>, %arg6: memref<4x64x128xf32, #tpu.memory_space<vmem>>, %arg7: memref<1x128xf32, #tpu.memory_space<vmem>>, %arg8: memref<128x128xf32, #tpu.memory_space<vmem>>, %arg9: memref<1x128xf32, #tpu.memory_space<vmem>>, %arg10: memref<8x128xf32, #tpu.memory_space<vmem>>) attributes {dimension_semantics = [#tpu.dimension_semantics<parallel>], iteration_bounds = array<i64: 2>, scalar_prefetch = 0 : i64, scratch_operands = 0 : i64, tpu.core_type = #tpu.core_type<tc>, window_params = [{transform_indices = @transform_0, window_bounds = array<i64: 8, 16, 9>}, {pipeline_mode = #tpu.pipeline_mode<synchronous>, transform_indices = @transform_1, window_bounds = array<i64: 3, 9, 32>}, {pipeline_mode = #tpu.pipeline_mode<synchronous>, transform_indices = @transform_2, window_bounds = array<i64: 1, 32>}, {pipeline_mode = #tpu.pipeline_mode<synchronous>, transform_indices = @transform_3, window_bounds = array<i64: 3, 32, 64>}, {pipeline_mode = #tpu.pipeline_mode<synchronous>, transform_indices = @transform_4, window_bounds = array<i64: 1, 64>}, {pipeline_mode = #tpu.pipeline_mode<synchronous>, transform_indices = @transform_5, window_bounds = array<i64: 4, 64, 128>}, {pipeline_mode = #tpu.pipeline_mode<synchronous>, transform_indices = @transform_6, window_bounds = array<i64: 1, 128>}, {pipeline_mode = #tpu.pipeline_mode<synchronous>, transform_indices = @transform_7, window_bounds = array<i64: 128, 128>}, {pipeline_mode = #tpu.pipeline_mode<synchronous>, transform_indices = @transform_8, window_bounds = array<i64: 1, 128>}, {transform_indices = @transform_9, window_bounds = array<i64: 8, 128>}]} {
    %c0 = arith.constant 0 : index
    %c0_0 = arith.constant 0 : index
    %c0_1 = arith.constant 0 : index
    %0 = vector.load %arg1[%c0, %c0_0, %c0_1] : memref<8x16x9xf32, #tpu.memory_space<vmem>>, vector<8x16x9xf32>
    %1 = vector.shape_cast %0 : vector<8x16x9xf32> to vector<128x9xf32>
    %2 = tpu.iota {dimensions = array<i32: 0>} : vector<128x1xi32>
    %c16_i32 = arith.constant 16 : i32
    %c0_i32 = arith.constant 0 : i32
    %3 = arith.cmpi eq, %c16_i32, %c0_i32 : i32
    %c1_i32 = arith.constant 1 : i32
    %4 = arith.select %3, %c1_i32, %c16_i32 : i32
    %5 = vector.broadcast %4 : i32 to vector<128x1xi32>
    %6 = arith.remsi %2, %5 : vector<128x1xi32>
    %c0_i32_2 = arith.constant 0 : i32
    %7 = vector.broadcast %c0_i32_2 : i32 to vector<128x1xi32>
    %8 = arith.cmpi ne, %6, %7 : vector<128x1xi32>
    %c0_i32_3 = arith.constant 0 : i32
    %9 = vector.broadcast %c0_i32_3 : i32 to vector<128x1xi32>
    %10 = arith.cmpi slt, %6, %9 : vector<128x1xi32>
    %c0_i32_4 = arith.constant 0 : i32
    %11 = arith.cmpi slt, %4, %c0_i32_4 : i32
    %12 = vector.broadcast %11 : i1 to vector<128x1xi1>
    %13 = vector.broadcast %12 : vector<128x1xi1> to vector<128x1xi1>
    %14 = arith.xori %10, %13 : vector<128x1xi1>
    %15 = arith.andi %14, %8 : vector<128x1xi1>
    %16 = vector.broadcast %4 : i32 to vector<128x1xi32>
    %17 = arith.addi %6, %16 : vector<128x1xi32>
    %18 = arith.select %15, %17, %6 : vector<128x1xi1>, vector<128x1xi32>
    %c0_i32_5 = arith.constant 0 : i32
    %19 = vector.broadcast %c0_i32_5 : i32 to vector<128x1xi32>
    %20 = arith.cmpi eq, %18, %19 : vector<128x1xi32>
    %c1_i32_6 = arith.constant 1 : i32
    %21 = tpu.dynamic_rotate %1 by %c1_i32_6 dim 0 : vector<128x9xf32>, i32 -> vector<128x9xf32>
    %cst = arith.constant 0.000000e+00 : f32
    %22 = vector.shape_cast %20 : vector<128x1xi1> to vector<128x1xi1>
    %23 = vector.broadcast %22 : vector<128x1xi1> to vector<128x9xi1>
    %24 = vector.broadcast %cst : f32 to vector<128x9xf32>
    %25 = arith.select %23, %24, %21 : vector<128x9xi1>, vector<128x9xf32>
    %c15_i32 = arith.constant 15 : i32
    %26 = vector.broadcast %c15_i32 : i32 to vector<128x1xi32>
    %27 = arith.cmpi eq, %18, %26 : vector<128x1xi32>
    %c127_i32 = arith.constant 127 : i32
    %28 = tpu.dynamic_rotate %1 by %c127_i32 dim 0 : vector<128x9xf32>, i32 -> vector<128x9xf32>
    %cst_7 = arith.constant 0.000000e+00 : f32
    %29 = vector.shape_cast %27 : vector<128x1xi1> to vector<128x1xi1>
    %30 = vector.broadcast %29 : vector<128x1xi1> to vector<128x9xi1>
    %31 = vector.broadcast %cst_7 : f32 to vector<128x9xf32>
    %32 = arith.select %30, %31, %28 : vector<128x9xi1>, vector<128x9xf32>
    %c0_8 = arith.constant 0 : index
    %c0_9 = arith.constant 0 : index
    %c0_10 = arith.constant 0 : index
    %33 = vector.load %arg2[%c0_8, %c0_9, %c0_10] : memref<3x9x32xf32, #tpu.memory_space<vmem>>, vector<1x9x32xf32>
    %34 = vector.shape_cast %33 : vector<1x9x32xf32> to vector<9x32xf32>
    %cst_11 = arith.constant dense<0.000000e+00> : vector<128x32xf32>
    %35 = tpu.matmul %25, %34, %cst_11 {dimension_numbers = #tpu.dot_dimension_numbers<[1], [0], [0], [1], [0, 0, 1, 1], [], []>} : vector<128x9xf32>, vector<9x32xf32>, vector<128x32xf32> -> vector<128x32xf32>
    %c1 = arith.constant 1 : index
    %c0_12 = arith.constant 0 : index
    %c0_13 = arith.constant 0 : index
    %36 = vector.load %arg2[%c1, %c0_12, %c0_13] : memref<3x9x32xf32, #tpu.memory_space<vmem>>, vector<1x9x32xf32>
    %37 = vector.shape_cast %36 : vector<1x9x32xf32> to vector<9x32xf32>
    %cst_14 = arith.constant dense<0.000000e+00> : vector<128x32xf32>
    %38 = tpu.matmul %1, %37, %cst_14 {dimension_numbers = #tpu.dot_dimension_numbers<[1], [0], [0], [1], [0, 0, 1, 1], [], []>} : vector<128x9xf32>, vector<9x32xf32>, vector<128x32xf32> -> vector<128x32xf32>
    %39 = arith.addf %35, %38 : vector<128x32xf32>
    %c2 = arith.constant 2 : index
    %c0_15 = arith.constant 0 : index
    %c0_16 = arith.constant 0 : index
    %40 = vector.load %arg2[%c2, %c0_15, %c0_16] : memref<3x9x32xf32, #tpu.memory_space<vmem>>, vector<1x9x32xf32>
    %41 = vector.shape_cast %40 : vector<1x9x32xf32> to vector<9x32xf32>
    %cst_17 = arith.constant dense<0.000000e+00> : vector<128x32xf32>
    %42 = tpu.matmul %32, %41, %cst_17 {dimension_numbers = #tpu.dot_dimension_numbers<[1], [0], [0], [1], [0, 0, 1, 1], [], []>} : vector<128x9xf32>, vector<9x32xf32>, vector<128x32xf32> -> vector<128x32xf32>
    %43 = arith.addf %39, %42 : vector<128x32xf32>
    %c0_18 = arith.constant 0 : index
    %c0_19 = arith.constant 0 : index
    %44 = vector.load %arg3[%c0_18, %c0_19] : memref<1x32xf32, #tpu.memory_space<vmem>>, vector<1x32xf32>
    %45 = vector.broadcast %44 : vector<1x32xf32> to vector<128x32xf32>
    %46 = arith.addf %43, %45 : vector<128x32xf32>
    %cst_20 = arith.constant 0.000000e+00 : f32
    %47 = vector.broadcast %cst_20 : f32 to vector<128x32xf32>
    %48 = arith.maximumf %46, %47 : vector<128x32xf32>
    %49 = vector.shape_cast %48 : vector<128x32xf32> to vector<64x2x32xf32>
    %cst_21 = arith.constant dense<0xFF800000> : vector<64x32xf32>
    %50 = vector.multi_reduction <maximumf>, %49, %cst_21 [1] : vector<64x2x32xf32> to vector<64x32xf32>
    %51 = tpu.iota {dimensions = array<i32: 0>} : vector<64x1xi32>
    %c8_i32 = arith.constant 8 : i32
    %c0_i32_22 = arith.constant 0 : i32
    %52 = arith.cmpi eq, %c8_i32, %c0_i32_22 : i32
    %c1_i32_23 = arith.constant 1 : i32
    %53 = arith.select %52, %c1_i32_23, %c8_i32 : i32
    %54 = vector.broadcast %53 : i32 to vector<64x1xi32>
    %55 = arith.remsi %51, %54 : vector<64x1xi32>
    %c0_i32_24 = arith.constant 0 : i32
    %56 = vector.broadcast %c0_i32_24 : i32 to vector<64x1xi32>
    %57 = arith.cmpi ne, %55, %56 : vector<64x1xi32>
    %c0_i32_25 = arith.constant 0 : i32
    %58 = vector.broadcast %c0_i32_25 : i32 to vector<64x1xi32>
    %59 = arith.cmpi slt, %55, %58 : vector<64x1xi32>
    %c0_i32_26 = arith.constant 0 : i32
    %60 = arith.cmpi slt, %53, %c0_i32_26 : i32
    %61 = vector.broadcast %60 : i1 to vector<64x1xi1>
    %62 = vector.broadcast %61 : vector<64x1xi1> to vector<64x1xi1>
    %63 = arith.xori %59, %62 : vector<64x1xi1>
    %64 = arith.andi %63, %57 : vector<64x1xi1>
    %65 = vector.broadcast %53 : i32 to vector<64x1xi32>
    %66 = arith.addi %55, %65 : vector<64x1xi32>
    %67 = arith.select %64, %66, %55 : vector<64x1xi1>, vector<64x1xi32>
    %c0_i32_27 = arith.constant 0 : i32
    %68 = vector.broadcast %c0_i32_27 : i32 to vector<64x1xi32>
    %69 = arith.cmpi eq, %67, %68 : vector<64x1xi32>
    %c1_i32_28 = arith.constant 1 : i32
    %70 = tpu.dynamic_rotate %50 by %c1_i32_28 dim 0 : vector<64x32xf32>, i32 -> vector<64x32xf32>
    %cst_29 = arith.constant 0.000000e+00 : f32
    %71 = vector.shape_cast %69 : vector<64x1xi1> to vector<64x1xi1>
    %72 = vector.broadcast %71 : vector<64x1xi1> to vector<64x32xi1>
    %73 = vector.broadcast %cst_29 : f32 to vector<64x32xf32>
    %74 = arith.select %72, %73, %70 : vector<64x32xi1>, vector<64x32xf32>
    %c7_i32 = arith.constant 7 : i32
    %75 = vector.broadcast %c7_i32 : i32 to vector<64x1xi32>
    %76 = arith.cmpi eq, %67, %75 : vector<64x1xi32>
    %c63_i32 = arith.constant 63 : i32
    %77 = tpu.dynamic_rotate %50 by %c63_i32 dim 0 : vector<64x32xf32>, i32 -> vector<64x32xf32>
    %cst_30 = arith.constant 0.000000e+00 : f32
    %78 = vector.shape_cast %76 : vector<64x1xi1> to vector<64x1xi1>
    %79 = vector.broadcast %78 : vector<64x1xi1> to vector<64x32xi1>
    %80 = vector.broadcast %cst_30 : f32 to vector<64x32xf32>
    %81 = arith.select %79, %80, %77 : vector<64x32xi1>, vector<64x32xf32>
    %c0_31 = arith.constant 0 : index
    %c0_32 = arith.constant 0 : index
    %c0_33 = arith.constant 0 : index
    %82 = vector.load %arg4[%c0_31, %c0_32, %c0_33] : memref<3x32x64xf32, #tpu.memory_space<vmem>>, vector<1x32x64xf32>
    %83 = vector.shape_cast %82 : vector<1x32x64xf32> to vector<32x64xf32>
    %cst_34 = arith.constant dense<0.000000e+00> : vector<64x64xf32>
    %84 = tpu.matmul %74, %83, %cst_34 {dimension_numbers = #tpu.dot_dimension_numbers<[1], [0], [0], [1], [0, 0, 1, 1], [], []>} : vector<64x32xf32>, vector<32x64xf32>, vector<64x64xf32> -> vector<64x64xf32>
    %c1_35 = arith.constant 1 : index
    %c0_36 = arith.constant 0 : index
    %c0_37 = arith.constant 0 : index
    %85 = vector.load %arg4[%c1_35, %c0_36, %c0_37] : memref<3x32x64xf32, #tpu.memory_space<vmem>>, vector<1x32x64xf32>
    %86 = vector.shape_cast %85 : vector<1x32x64xf32> to vector<32x64xf32>
    %cst_38 = arith.constant dense<0.000000e+00> : vector<64x64xf32>
    %87 = tpu.matmul %50, %86, %cst_38 {dimension_numbers = #tpu.dot_dimension_numbers<[1], [0], [0], [1], [0, 0, 1, 1], [], []>} : vector<64x32xf32>, vector<32x64xf32>, vector<64x64xf32> -> vector<64x64xf32>
    %88 = arith.addf %84, %87 : vector<64x64xf32>
    %c2_39 = arith.constant 2 : index
    %c0_40 = arith.constant 0 : index
    %c0_41 = arith.constant 0 : index
    %89 = vector.load %arg4[%c2_39, %c0_40, %c0_41] : memref<3x32x64xf32, #tpu.memory_space<vmem>>, vector<1x32x64xf32>
    %90 = vector.shape_cast %89 : vector<1x32x64xf32> to vector<32x64xf32>
    %cst_42 = arith.constant dense<0.000000e+00> : vector<64x64xf32>
    %91 = tpu.matmul %81, %90, %cst_42 {dimension_numbers = #tpu.dot_dimension_numbers<[1], [0], [0], [1], [0, 0, 1, 1], [], []>} : vector<64x32xf32>, vector<32x64xf32>, vector<64x64xf32> -> vector<64x64xf32>
    %92 = arith.addf %88, %91 : vector<64x64xf32>
    %c0_43 = arith.constant 0 : index
    %c0_44 = arith.constant 0 : index
    %93 = vector.load %arg5[%c0_43, %c0_44] : memref<1x64xf32, #tpu.memory_space<vmem>>, vector<1x64xf32>
    %94 = vector.broadcast %93 : vector<1x64xf32> to vector<64x64xf32>
    %95 = arith.addf %92, %94 : vector<64x64xf32>
    %cst_45 = arith.constant 0.000000e+00 : f32
    %96 = vector.broadcast %cst_45 : f32 to vector<64x64xf32>
    %97 = arith.maximumf %95, %96 : vector<64x64xf32>
    %98 = vector.shape_cast %97 : vector<64x64xf32> to vector<32x2x64xf32>
    %cst_46 = arith.constant dense<0xFF800000> : vector<32x64xf32>
    %99 = vector.multi_reduction <maximumf>, %98, %cst_46 [1] : vector<32x2x64xf32> to vector<32x64xf32>
    %100 = vector.shape_cast %99 : vector<32x64xf32> to vector<8x4x64xf32>
    %101 = vector.extract_strided_slice %100 {offsets = [0, 0, 0], sizes = [8, 1, 64], strides = [1, 1, 1]} : vector<8x4x64xf32> to vector<8x1x64xf32>
    %102 = vector.shape_cast %101 : vector<8x1x64xf32> to vector<8x64xf32>
    %c0_47 = arith.constant 0 : index
    %c0_48 = arith.constant 0 : index
    %c0_49 = arith.constant 0 : index
    %103 = vector.load %arg6[%c0_47, %c0_48, %c0_49] : memref<4x64x128xf32, #tpu.memory_space<vmem>>, vector<1x64x128xf32>
    %104 = vector.shape_cast %103 : vector<1x64x128xf32> to vector<64x128xf32>
    %cst_50 = arith.constant dense<0.000000e+00> : vector<8x128xf32>
    %105 = tpu.matmul %102, %104, %cst_50 {dimension_numbers = #tpu.dot_dimension_numbers<[1], [0], [0], [1], [0, 0, 1, 1], [], []>} : vector<8x64xf32>, vector<64x128xf32>, vector<8x128xf32> -> vector<8x128xf32>
    %106 = vector.extract_strided_slice %100 {offsets = [0, 1, 0], sizes = [8, 1, 64], strides = [1, 1, 1]} : vector<8x4x64xf32> to vector<8x1x64xf32>
    %107 = vector.shape_cast %106 : vector<8x1x64xf32> to vector<8x64xf32>
    %c1_51 = arith.constant 1 : index
    %c0_52 = arith.constant 0 : index
    %c0_53 = arith.constant 0 : index
    %108 = vector.load %arg6[%c1_51, %c0_52, %c0_53] : memref<4x64x128xf32, #tpu.memory_space<vmem>>, vector<1x64x128xf32>
    %109 = vector.shape_cast %108 : vector<1x64x128xf32> to vector<64x128xf32>
    %cst_54 = arith.constant dense<0.000000e+00> : vector<8x128xf32>
    %110 = tpu.matmul %107, %109, %cst_54 {dimension_numbers = #tpu.dot_dimension_numbers<[1], [0], [0], [1], [0, 0, 1, 1], [], []>} : vector<8x64xf32>, vector<64x128xf32>, vector<8x128xf32> -> vector<8x128xf32>
    %111 = arith.addf %105, %110 : vector<8x128xf32>
    %112 = vector.extract_strided_slice %100 {offsets = [0, 2, 0], sizes = [8, 1, 64], strides = [1, 1, 1]} : vector<8x4x64xf32> to vector<8x1x64xf32>
    %113 = vector.shape_cast %112 : vector<8x1x64xf32> to vector<8x64xf32>
    %c2_55 = arith.constant 2 : index
    %c0_56 = arith.constant 0 : index
    %c0_57 = arith.constant 0 : index
    %114 = vector.load %arg6[%c2_55, %c0_56, %c0_57] : memref<4x64x128xf32, #tpu.memory_space<vmem>>, vector<1x64x128xf32>
    %115 = vector.shape_cast %114 : vector<1x64x128xf32> to vector<64x128xf32>
    %cst_58 = arith.constant dense<0.000000e+00> : vector<8x128xf32>
    %116 = tpu.matmul %113, %115, %cst_58 {dimension_numbers = #tpu.dot_dimension_numbers<[1], [0], [0], [1], [0, 0, 1, 1], [], []>} : vector<8x64xf32>, vector<64x128xf32>, vector<8x128xf32> -> vector<8x128xf32>
    %117 = arith.addf %111, %116 : vector<8x128xf32>
    %118 = vector.extract_strided_slice %100 {offsets = [0, 3, 0], sizes = [8, 1, 64], strides = [1, 1, 1]} : vector<8x4x64xf32> to vector<8x1x64xf32>
    %119 = vector.shape_cast %118 : vector<8x1x64xf32> to vector<8x64xf32>
    %c3 = arith.constant 3 : index
    %c0_59 = arith.constant 0 : index
    %c0_60 = arith.constant 0 : index
    %120 = vector.load %arg6[%c3, %c0_59, %c0_60] : memref<4x64x128xf32, #tpu.memory_space<vmem>>, vector<1x64x128xf32>
    %121 = vector.shape_cast %120 : vector<1x64x128xf32> to vector<64x128xf32>
    %cst_61 = arith.constant dense<0.000000e+00> : vector<8x128xf32>
    %122 = tpu.matmul %119, %121, %cst_61 {dimension_numbers = #tpu.dot_dimension_numbers<[1], [0], [0], [1], [0, 0, 1, 1], [], []>} : vector<8x64xf32>, vector<64x128xf32>, vector<8x128xf32> -> vector<8x128xf32>
    %123 = arith.addf %117, %122 : vector<8x128xf32>
    %c0_62 = arith.constant 0 : index
    %c0_63 = arith.constant 0 : index
    %124 = vector.load %arg7[%c0_62, %c0_63] : memref<1x128xf32, #tpu.memory_space<vmem>>, vector<1x128xf32>
    %125 = vector.broadcast %124 : vector<1x128xf32> to vector<8x128xf32>
    %126 = arith.addf %123, %125 : vector<8x128xf32>
    %cst_64 = arith.constant 0.000000e+00 : f32
    %127 = vector.broadcast %cst_64 : f32 to vector<8x128xf32>
    %128 = arith.maximumf %126, %127 : vector<8x128xf32>
    %c0_65 = arith.constant 0 : index
    %c0_66 = arith.constant 0 : index
    %129 = vector.load %arg8[%c0_65, %c0_66] : memref<128x128xf32, #tpu.memory_space<vmem>>, vector<128x128xf32>
    %cst_67 = arith.constant dense<0.000000e+00> : vector<8x128xf32>
    %130 = tpu.matmul %128, %129, %cst_67 {dimension_numbers = #tpu.dot_dimension_numbers<[1], [0], [0], [1], [0, 0, 1, 1], [], []>} : vector<8x128xf32>, vector<128x128xf32>, vector<8x128xf32> -> vector<8x128xf32>
    %c0_68 = arith.constant 0 : index
    %c0_69 = arith.constant 0 : index
    %131 = vector.load %arg9[%c0_68, %c0_69] : memref<1x128xf32, #tpu.memory_space<vmem>>, vector<1x128xf32>
    %132 = vector.broadcast %131 : vector<1x128xf32> to vector<8x128xf32>
    %133 = arith.addf %130, %132 : vector<8x128xf32>
    %c0_70 = arith.constant 0 : index
    %c0_71 = arith.constant 0 : index
    %134 = vector.load %arg10[%c0_70, %c0_71] : memref<8x128xf32, #tpu.memory_space<vmem>>, vector<8x128xf32>
    tpu.vector_store %arg10[%c0_70, %c0_71], %133 {strides = array<i32>} : memref<8x128xf32, #tpu.memory_space<vmem>>, vector<8x128xf32>,
    return
  }
  func.func @transform_0(%arg0: i32) -> (i32, i32, i32) {
    %c0_i32 = arith.constant 0 : i32
    %c0_i32_0 = arith.constant 0 : i32
    %c0_i32_1 = arith.constant 0 : i32
    return %arg0, %c0_i32, %c0_i32_0 : i32, i32, i32
  }
  func.func @transform_1(%arg0: i32) -> (i32, i32, i32) {
    %c0_i32 = arith.constant 0 : i32
    %c0_i32_0 = arith.constant 0 : i32
    %c0_i32_1 = arith.constant 0 : i32
    %c0_i32_2 = arith.constant 0 : i32
    return %c0_i32, %c0_i32_0, %c0_i32_1 : i32, i32, i32
  }
  func.func @transform_2(%arg0: i32) -> (i32, i32) {
    %c0_i32 = arith.constant 0 : i32
    %c0_i32_0 = arith.constant 0 : i32
    %c0_i32_1 = arith.constant 0 : i32
    return %c0_i32, %c0_i32_0 : i32, i32
  }
  func.func @transform_3(%arg0: i32) -> (i32, i32, i32) {
    %c0_i32 = arith.constant 0 : i32
    %c0_i32_0 = arith.constant 0 : i32
    %c0_i32_1 = arith.constant 0 : i32
    %c0_i32_2 = arith.constant 0 : i32
    return %c0_i32, %c0_i32_0, %c0_i32_1 : i32, i32, i32
  }
  func.func @transform_4(%arg0: i32) -> (i32, i32) {
    %c0_i32 = arith.constant 0 : i32
    %c0_i32_0 = arith.constant 0 : i32
    %c0_i32_1 = arith.constant 0 : i32
    return %c0_i32, %c0_i32_0 : i32, i32
  }
  func.func @transform_5(%arg0: i32) -> (i32, i32, i32) {
    %c0_i32 = arith.constant 0 : i32
    %c0_i32_0 = arith.constant 0 : i32
    %c0_i32_1 = arith.constant 0 : i32
    %c0_i32_2 = arith.constant 0 : i32
    return %c0_i32, %c0_i32_0, %c0_i32_1 : i32, i32, i32
  }
  func.func @transform_6(%arg0: i32) -> (i32, i32) {
    %c0_i32 = arith.constant 0 : i32
    %c0_i32_0 = arith.constant 0 : i32
    %c0_i32_1 = arith.constant 0 : i32
    return %c0_i32, %c0_i32_0 : i32, i32
  }
  func.func @transform_7(%arg0: i32) -> (i32, i32) {
    %c0_i32 = arith.constant 0 : i32
    %c0_i32_0 = arith.constant 0 : i32
    %c0_i32_1 = arith.constant 0 : i32
    return %c0_i32, %c0_i32_0 : i32, i32
  }
  func.func @transform_8(%arg0: i32) -> (i32, i32) {
    %c0_i32 = arith.constant 0 : i32
    %c0_i32_0 = arith.constant 0 : i32
    %c0_i32_1 = arith.constant 0 : i32
    return %c0_i32, %c0_i32_0 : i32, i32
  }
  func.func @transform_9(%arg0: i32) -> (i32, i32) {
    %c0_i32 = arith.constant 0 : i32
    %c0_i32_0 = arith.constant 0 : i32
    return %arg0, %c0_i32 : i32, i32
  }
}

</mosaic_0001>

<bundles_post_ra>
// kernel: _lambda_.1
= control target key start
LH: loop header
LB: loop body
LE: loop exit
PB: predicated region body
PF: predicated region fallthrough
CT: control target
= control target key end

     0   :  { %14 = vsyncpa [#allocation3], 0  ;;  %s6143_s0 = inlined_call_operand.vmem [shape: f32[16,16,9], index: 0, kind: input, shape index: {}]   ;;  %s6144_s1 = inlined_call_operand.hbm [shape: f32[3,9,32], index: 1, kind: input, shape index: {}]   ;;  %s6145_s2 = inlined_call_operand.vmem [shape: f32[1,32], index: 2, kind: input, shape index: {}]   ;;  %s6146_s3 = inlined_call_operand.hbm [shape: f32[3,32,64], index: 3, kind: input, shape index: {}]   ;;  %s6147_s4 = inlined_call_operand.vmem [shape: f32[1,64], index: 4, kind: input, shape index: {}]   ;;  %s6148_s5 = inlined_call_operand.vmem [shape: f32[4,64,128], index: 5, kind: input, shape index: {}]   ;;  %s6149_s6 = inlined_call_operand.vmem [shape: f32[1,128], index: 6, kind: input, shape index: {}]   ;;  %s6150_s7 = inlined_call_operand.vmem [shape: f32[128,128], index: 7, kind: input, shape index: {}]   ;;  %s6151_s8 = inlined_call_operand.vmem [shape: f32[1,128], index: 8, kind: input, shape index: {}]   ;;  %s6152_s9 = inlined_call_operand.vmem [shape: f32[16,128], index: 9, kind: output, shape index: {}]  }
   0x1   :  { %15 = vsyncpa [#allocation5], 0  ;;  %s4808_s30 = smov 0  }
   0x2 LB: > { %s4814_s10 = sadd.s32 4294967295, %s4747_s30   ;;  %p3958_p0 = scmp.ge.s32.totalorder %s4747_s30, 1  ;;  %s4747_s30 = sphi %s4808_s30, %s21_s30  }
   0x3   : > { %p246_p1 = scmp.lt.s32.totalorder %s4747_s30, 3  ;;  %s4749_s11 = smov [#allocation2]  }
   0x4   : > { %s258_s12 = sshll.u32 %s4749_s11, 4  ;;  %p6153_p3 = scmp.eq.s32.totalorder %s4814_s10, 0  ;;  %s259_s12 = int_to_ptr.vmem [resolvable:$true] %s258_s12 }
   0x5   : > { %p4818_p2 = pnand %p3958_p0, %p246_p1  ;;  %s4750_s14 = smov [#allocation4]  }
   0x6   : > { %s274_s15 = sshll.u32 %s4750_s14, 4  ;;  %s4677_s19 = scalar_lea.hbm %s6144_s1, 768  ;;  %s4831_s15 = int_to_ptr.vmem [resolvable:$true] %s274_s15 }
   0x7   : > { %s6172_s13 = scalar_select %p4818_p2, 1, 0 }
   0x8   : > { %p4649_p4 = pneg %p4818_p2  ;;  %p4678_p6 = scmp.ne.s32.totalorder %s6144_s1, %s4677_s19 }
   0x9   : > { %p4684_p10 = scmp.lt.u32.totalorder %s4677_s19, %s6144_s1 }
   0xa   : > { %p4827_p5 = pnand %p6153_p3, %p4649_p4 }
   0xc   : > { %p4679_p7 = pneg %p4827_p5 }
   0xe   : > { %p4680_p8 = pnand %p4679_p7, %p4678_p6 }
  0x10   : > { %p4681_p9 = pneg %p4680_p8 }
  0x12   : > { %p4686_p11 = pnand %p4684_p10, %p4681_p9 }
  0x14   : > { %4689 = shalt.err (!%p4686_p11)
}
  0x15   : > { %s4690_s24 = scalar_lea.vmem %s259_s12, 768  ;;  %p4698_p1 = scmp.lt.s32.totalorder %s259_s12, %s259_s12 }
  0x16   : > { %p4691_p12 = scmp.ne.s32.totalorder %s259_s12, %s4690_s24  ;;  %p4699_p4 = scmp.lt.s32.totalorder %s4690_s24, %s4690_s24 }
  0x18   : > { %p4693_p13 = pnand %p4691_p12, %p4679_p7  ;;  %p4700_p3 = por %p4699_p4, %p4698_p1 }
  0x1a   : > { %p4694_p0 = pneg %p4693_p13 }
  0x1c   : > { %p4701_p2 = pnand %p4700_p3, %p4694_p0 }
  0x1e   : > { %4704 = shalt.err (!%p4701_p2)
}
  0x1f   : > { %s4751_s25 = smov 128   ;;  %s4752_s26 = smov 8  }
  0x20   : > { %4652 = dma.hbm_to_vmem [thread:$0]  (!%p4827_p5), %s6144_s1, 768, %s259_s12, [#allocation3], %s4751_s25, %s4751_s25, %s4752_s26  }
  0x21   : > { %s4705_s14 = scalar_lea.hbm %s6146_s3, 1536 }
  0x22   : > { %p4706_p6 = scmp.ne.s32.totalorder %s6146_s3, %s4705_s14  ;;  %p4712_p8 = scmp.lt.u32.totalorder %s4705_s14, %s6146_s3 }
  0x24   : > { %p4708_p2 = pnand %p4706_p6, %p4679_p7 }
  0x26   : > { %p4709_p3 = pneg %p4708_p2 }
  0x28   : > { %p4714_p9 = pnand %p4712_p8, %p4709_p3 }
  0x2a   : > { %4717 = shalt.err (!%p4714_p9)
}
  0x2b   : > { %s4718_s12 = scalar_lea.vmem %s4831_s15, 1536  ;;  %p4726_p13 = scmp.lt.s32.totalorder %s4831_s15, %s4831_s15 }
  0x2c   : > { %p4719_p10 = scmp.ne.s32.totalorder %s4831_s15, %s4718_s12  ;;  %p4727_p0 = scmp.lt.s32.totalorder %s4718_s12, %s4718_s12 }
  0x2e   : > { %p4721_p11 = pnand %p4719_p10, %p4679_p7  ;;  %p4728_p1 = por %p4727_p0, %p4726_p13 }
  0x30   : > { %p4722_p12 = pneg %p4721_p11 }
  0x32   : > { %p4729_p4 = pnand %p4728_p1, %p4722_p12 }
  0x34   : > { %4732 = shalt.err (!%p4729_p4)
}
  0x35   : > { %4655 = dma.hbm_to_vmem [thread:$0]  (!%p4827_p5), %s6146_s3, 1536, %s4831_s15, [#allocation5], %s4751_s25, %s4751_s25, %s4752_s26  }
  0x36   : > { %p6174_p6 = scmp.ne.s32.totalorder %s6172_s13, 0 }
  0x38   : > { %315 = sbr.rel (%p6174_p6) target bundleno = 1296 (0x510), region = 56 }
  0x3f   : > { %p6175_p2 = scmp.eq.s32.totalorder %s4814_s10, 0 }
  0x41   : > { %4738 = dma.done.wait (%p6175_p2), [#allocation3], 768   ;;  %p6176_p7 = pmov %p6175_p2 }
  0x42   : > { %p6177_p3 = pmov %p6175_p2 }
  0x43   : > { %4740 = vsyncadd (%p6176_p7), [#allocation3], 4294966528 }
  0x44   : > { %4742 = dma.done.wait (%p6177_p3), [#allocation5], 1536   ;;  %p6178_p8 = pmov %p6175_p2 }
  0x45   : > { %s3965_s16 = sshll.u32 %s4814_s10, 3  ;;  %vm839_vm0 = vcmask 1040384   ;;  %vm790_vm1 = vcmask 72704   ;;  %vm4753_vm2 = vmmov 1   ;;  %v788_v1 = vld [vmem:[#allocation2 + $0x10] sm:$0xff]  ;;  %v785_v5 = vld [vmem:[#allocation2] sm:$0xff]  ;;  %v382_v17 = vlaneseq }
  0x46   : > { %4744 = vsyncadd (%p6178_p8), [#allocation5], 4294965760  ;;  %p356_p9 = scmp.lt.s32.totalorder %s3965_s16, 15  ;;  %v789_v2 = vld [vmem:[#allocation2 + $0x18] sm:$0x1]  ;;  %v1185_v10 = vld [vmem:[#allocation2 + $0x20] sm:$0xff] }
  0x47   : > { %vm4891_vm3 = vmpackc.low %vm839_vm0, %vm4753_vm2  ;;  %v4477_v4 = vpack.c.bf16 %v789_v2, %v788_v1  ;;  %v786_v6 = vld [vmem:[#allocation2 + $0x8] sm:$0x1]  ;;  %v4966_v22 = vshrl.u32 %v382_v17, 7  ;;  %p362_p5 = scmp.lt.s32.totalorder %s4814_s10, 1 }
  0x48   : > { %s6248_s16 = smov (!%p356_p9, %s3965_s16), 15  ;;  %v4483_v7 = vpack.c.bf16 %v786_v6, %v785_v5  ;;  %v1186_v12 = vld [vmem:[#allocation2 + $0x28] sm:$0x1] }
  0x49   : > { %s4078_s15 = sshll.u32 %s6248_s16, 4  ;;  %4479 = vmatprep.subr.msk.bf16.mxu0 %vm4891_vm3, %v4477_v4  ;;  %4591 = vmatprep.subr.msk.bf16.mxu1 %vm4891_vm3, %v4477_v4  ;;  %v4936_v15 = vpack.c.bf16 %v1186_v12, %v1185_v10  ;;  %6181 = vst [vmem:[#allocation8_spill] sm:$0xff] %v4966_v22  ;;  %v403_v26 = vand.u32 15, %v4966_v22  ;;  %v4984_v28 = vadd.s32 16, %v4966_v22  ;;  %vm623_vm4 = vcmp.lt.s32.totalorder %v4966_v22, 1  ;;  %s6250_s10 = smov (!%p362_p5, %s4814_s10), 1 }
  0x4a   : > { %s4898_s24 = scalar_lea.vmem %s6143_s0, %s4078_s15  ;;  %4482 = vmatpush3.bf16.msk.msra.mxu0 %vm4891_vm3, %v4477_v4  ;;  %4592 = vmatpush3.bf16.msk.msra.mxu1 %vm4891_vm3, %v4477_v4  ;;  %v4998_v31 = vadd.s32 32, %v4966_v22  ;;  %v5019_v38 = vadd.s32 48, %v4966_v22  ;;  %vm720_vm7 = vcmp.lt.s32.totalorder %v4966_v22, 7  ;;  %v391_v53 = vadd.s32 64, %v4966_v22  ;;  %s3968_s17 = sshll.u32 %s6250_s10, 3 }
  0x4b   : > { %v4901_v3 = vld [vmem:[%s4898_s24] sm:$0xff]  ;;  %v4912_v8 = vld [vmem:[%s4898_s24 + $0x8] sm:$0xff]  ;;  %4485 = vmatprep.subr.msk.bf16.mxu0 %vm4891_vm3, %v4483_v7  ;;  %v4919_v9 = vld [vmem:[%s4898_s24 + $0x10] sm:$0xff]  ;;  %6182 = vst [vmem:[#allocation9_spill] sm:$0xff] %v4984_v28  ;;  %vm5001_vm5 = vcmp.eq.s32.totalorder %v403_v26, 0  ;;  %v417_v35 = vand.u32 15, %v4984_v28  ;;  %s365_s21 = scalar_lea.vmem %s6152_s9, %s3968_s17 }
  0x4c   : > { %4226 = vmatprep.mubr.msk.f32.mxu0 %vm790_vm1, %v4901_v3  ;;  %v4928_v11 = vld [vmem:[%s4898_s24 + $0x18] sm:$0xff]  ;;  %v4931_v13 = vld [vmem:[%s4898_s24 + $0x60] sm:$0xff]  ;;  %v4939_v16 = vld [vmem:[%s4898_s24 + $0x68] sm:$0xff]  ;;  %v607_v25 = vrot.slane %v4901_v3, 7  ;;  %6183 = vst [vmem:[#allocation10_spill] sm:$0xff] %v4998_v31  ;;  %v609_v32 = vrot.slane %v4919_v9, 7 }
  0x4d   : > { %4227 = vmatmul.mubr.msk.f32.vlgmr.msra.gmra.mrb[0].mxu0 %vm790_vm1, %v4912_v8  ;;  %v4934_v14 = vld [vmem:[%s4898_s24 + $0x20] sm:$0xff]  ;;  %4244 = vmatprep.mubr.msk.f32.mxu1 %vm790_vm1, %v4931_v13  ;;  %v4951_v18 = vld [vmem:[%s4898_s24 + $0x70] sm:$0xff]  ;;  %v4956_v19 = vld [vmem:[%s4898_s24 + $0x28] sm:$0xff]  ;;  %v608_v36 = vrot.slane %v4912_v8, 7  ;;  %6186 = vst [vmem:[#allocation11_spill] sm:$0xff] %v5019_v38  ;;  %v431_v40 = vand.u32 15, %v4998_v31 }
  0x4e   : > { %4488 = vmatpush3.bf16.msk.msra.mxu0 %vm4891_vm3, %v4483_v7  ;;  %4229 = vmatprep.mubr.msk.f32.mxu0 %vm790_vm1, %v4919_v9  ;;  %v4961_v20 = vld [vmem:[%s4898_s24 + $0x30] sm:$0xff]  ;;  %v4964_v21 = vld [vmem:[%s4898_s24 + $0x78] sm:$0xff]  ;;  %v4978_v24 = vld [vmem:[%s4898_s24 + $0x40] sm:$0xff]  ;;  %v716_v41 = vrot.slane %v4931_v13, 1  ;;  %v717_v42 = vrot.slane %v4939_v16, 1  ;;  %v611_v43 = vrot.slane %v4934_v14, 7 }
  0x4f   : > { %4245 = vmatmul.mubr.msk.f32.vlgmr.msra.gmra.mrb[0].mxu1 %vm790_vm1, %v4939_v16  ;;  %4491 = vmatprep.subr.msk.bf16.mxu0 %vm4891_vm3, %v4936_v15  ;;  %v4975_v23 = vld [vmem:[%s4898_s24 + $0x38] sm:$0xff]  ;;  %v622_v27 = vrot.slane %v4964_v21, 7  ;;  %v4992_v29 = vld [vmem:[%s4898_s24 + $0x48] sm:$0xff]  ;;  %v4995_v30 = vld [vmem:[%s4898_s24 + $0x50] sm:$0xff]  ;;  %vm5027_vm6 = vcmp.eq.s32.totalorder %v417_v35, 0  ;;  %v637_v45 = vsel %vm623_vm4, %v608_v36, %v609_v32  ;;  %v718_v47 = vrot.slane %v4951_v18, 1 }
  0x50   : > { %4247 = vmatprep.mubr.msk.f32.mxu1 %vm790_vm1, %v4951_v18  ;;  %v5016_v37 = vld [vmem:[%s4898_s24 + $0x58] sm:$0xff]  ;;  %v5040_v46 = vsel %vm720_vm7, %v716_v41, %v717_v42  ;;  %v610_v48 = vrot.slane %v4928_v11, 7  ;;  %v638_v49 = vsel %vm623_vm4, %v607_v25, %v608_v36  ;;  %v719_v50 = vrot.slane %v4964_v21, 1 }
  0x51   : > { %4230 = vmatmul.mubr.msk.f32.gmra.mrb[2].mxu0 %vm790_vm1, %v4928_v11  ;;  %v639_v34 = vsel %vm623_vm4, %v622_v27, %v607_v25  ;;  %v674_v51 = vsel %vm5027_vm6, 0.0, %v637_v45  ;;  %v445_v52 = vand.u32 15, %v5019_v38  ;;  %v5054_v54 = vsel %vm720_vm7, %v717_v42, %v718_v47 }
  0x52   : > { %4232 = vmatprep.mubr.msk.f32.mxu0 %vm790_vm1, %v4934_v14  ;;  %v672_v39 = vsel %vm5001_vm5, 0.0, %v639_v34  ;;  %v613_v55 = vrot.slane %v4961_v20, 7  ;;  %vm5057_vm8 = vcmp.eq.s32.totalorder %v431_v40, 0  ;;  %v635_v57 = vsel %vm623_vm4, %v610_v48, %v611_v43 }
  0x53   : > { %4248 = vmatmul.mubr.msk.f32.gmra.mrb[2].mxu1 %vm790_vm1, %v4964_v21  ;;  %v5067_v58 = vsel %vm720_vm7, %v718_v47, %v719_v50  ;;  %v612_v59 = vrot.slane %v4956_v19, 7  ;;  %v636_v60 = vsel %vm623_vm4, %v609_v32, %v610_v48  ;;  %v676_v61 = vsel %vm5057_vm8, 0.0, %v635_v57 }
  0x54   : > { %v393_v62 = vadd.s32 80, %v4966_v22  ;;  %v615_v63 = vrot.slane %v4978_v24, 7  ;;  %vm5081_vm9 = vcmp.eq.s32.totalorder %v445_v52, 0  ;;  %v459_v2 = vand.u32 15, %v391_v53 }
  0x55   : > { %4233 = vmatmul.mubr.msk.f32.gmra.mrb[4].mxu0 %vm790_vm1, %v4956_v19  ;;  %v633_v0 = vsel %vm623_vm4, %v612_v59, %v613_v55  ;;  %v614_v4 = vrot.slane %v4975_v23, 7  ;;  %v634_v5 = vsel %vm623_vm4, %v611_v43, %v612_v59  ;;  %v617_v6 = vrot.slane %v4995_v30, 7 }
  0x56   : > { %4235 = vmatprep.mubr.msk.f32.mxu0 %vm790_vm1, %v4961_v20  ;;  %v678_v7 = vsel %vm5081_vm9, 0.0, %v633_v0  ;;  %vm5095_vm10 = vcmp.eq.s32.totalorder %v459_v2, 0  ;;  %v395_v17 = vadd.s32 96, %v4966_v22  ;;  %v616_v25 = vrot.slane %v4992_v29, 7 }
  0x57   : > { %v631_v12 = vsel %vm623_vm4, %v614_v4, %v615_v63  ;;  %v632_v26 = vsel %vm623_vm4, %v613_v55, %v614_v4  ;;  %v619_v35 = vrot.slane %v4931_v13, 7  ;;  %v397_v36 = vadd.s32 112, %v4966_v22 }
  0x58   : > { %v680_v32 = vsel %vm5095_vm10, 0.0, %v631_v12  ;;  %v629_v33 = vsel %vm623_vm4, %v616_v25, %v617_v6  ;;  %v487_v34 = vand.u32 15, %v395_v17  ;;  %v630_v40 = vsel %vm623_vm4, %v615_v63, %v616_v25 }
  0x59   : > { %4236 = vmatmul.mubr.msk.f32.gmra.mrb[6].mxu0 %vm790_vm1, %v4975_v23  ;;  %v501_v45 = vand.u32 15, %v397_v36  ;;  %v621_v47 = vrot.slane %v4951_v18, 7  ;;  %v5133_v52 = vadd.s32 8, %v4966_v22  ;;  %v704_v18 = vrot.slane %v4901_v3, 1 }
  0x5a   : > { %4238 = vmatprep.mubr.msk.f32.mxu0 %vm790_vm1, %v4978_v24  ;;  %vm5118_vm12 = vcmp.eq.s32.totalorder %v487_v34, 0  ;;  %v705_v55 = vrot.slane %v4912_v8, 1  ;;  %v706_v56 = vrot.slane %v4919_v9, 1  ;;  %v709_v1 = vrot.slane %v4956_v19, 1 }
  0x5b   : > { %6197 = vst [vmem:[#allocation12_spill] sm:$0xff] %v5133_v52  ;;  %vm605_vm13 = vcmp.eq.s32.totalorder %v501_v45, 0  ;;  %v410_v59 = vand.u32 15, %v5133_v52  ;;  %v624_v8 = vsel %vm623_vm4, %v621_v47, %v622_v27  ;;  %v710_v27 = vrot.slane %v4961_v20, 1 }
  0x5c   : > { %v735_v9 = vsel %vm720_vm7, %v704_v18, %v705_v55  ;;  %v734_v63 = vsel %vm720_vm7, %v705_v55, %v706_v56  ;;  %v711_v19 = vrot.slane %v4975_v23, 1  ;;  %v712_v20 = vrot.slane %v4978_v24, 1  ;;  %v2574_v55 = vld [vmem:[#allocation4 + $0x38] sm:$0xff] }
  0x5d   : > { %4239 = vmatmul.mubr.msk.f32.gmra.mrb[8].mxu0 %vm790_vm1, %v4992_v29  ;;  %vm689_vm14 = vcmp.eq.s32.totalorder %v410_v59, 15  ;;  %v730_v12 = vsel %vm720_vm7, %v709_v1, %v710_v27  ;;  %v392_v17 = vadd.s32 72, %v4966_v22  ;;  %v713_v23 = vrot.slane %v4992_v29, 1  ;;  %v5241_v59 = vld [vmem:[%s6145_s2] ss:$0 sm:$0xff] }
  0x5e   : > { %4241 = vmatprep.mubr.msk.f32.mxu0 %vm790_vm1, %v4995_v30  ;;  %v770_v0 = vsel %vm689_vm14, 0.0, %v734_v63  ;;  %v714_v24 = vrot.slane %v4995_v30, 1  ;;  %v394_v34 = vadd.s32 88, %v4966_v22  ;;  %v398_v45 = vadd.s32 120, %v4966_v22 }
  0x5f   : > { %v727_v30 = vsel %vm720_vm7, %v712_v20, %v713_v23  ;;  %vm2407_vm9 = vcmask 1041409   ;;  %vm2409_vm10 = vcmask 1042434   ;;  %vm2417_vm14 = vcmask 1046534  }
  0x60   : > { %v726_v36 = vsel %vm720_vm7, %v713_v23, %v714_v24 }
  0x61   : > { %4242 = vmatmul.mubr.msk.f32.gmra.mrb[10].mxu0 %vm790_vm1, %v5016_v37 }
  0x62   : > { %4254 = vmatprep.mubr.msk.f32.mxu0 %vm790_vm1, %v672_v39  ;;  %v618_v39 = vrot.slane %v5016_v37, 7 }
  0x64   : > { %v627_v44 = vsel %vm623_vm4, %v618_v39, %v619_v35  ;;  %v628_v48 = vsel %vm623_vm4, %v617_v6, %v618_v39  ;;  %v5176_v6 = vadd.s32 56, %v4966_v22  ;;  %v480_v39 = vand.u32 15, %v394_v34 }
  0x65   : > { %4255 = vmatmul.mubr.msk.f32.vlgmr.msra.gmra.mrb[0].mxu0 %vm790_vm1, %v638_v49  ;;  %v620_v49 = vrot.slane %v4939_v16, 7 }
  0x66   : > { %4494 = vmatpush3.bf16.msk.msra.mxu0 %vm4891_vm3, %v4936_v15  ;;  %4257 = vmatprep.mubr.msk.f32.mxu0 %vm790_vm1, %v674_v51  ;;  %v473_v15 = vand.u32 15, %v393_v62  ;;  %v684_v51 = vsel %vm5118_vm12, 0.0, %v627_v44  ;;  %v708_v62 = vrot.slane %v4934_v14, 1  ;;  %v5164_v14 = vadd.s32 40, %v4966_v22  ;;  %6200 = vst [vmem:[#allocation15_spill] sm:$0xff] %v5176_v6 }
  0x67   : > { %v625_v53 = vsel %vm623_vm4, %v620_v49, %v621_v47  ;;  %v626_v16 = vsel %vm623_vm4, %v619_v35, %v620_v49  ;;  %v715_v35 = vrot.slane %v5016_v37, 1  ;;  %vm699_vm5 = vcmp.eq.s32.totalorder %v480_v39, 15 }
  0x68   : > { %vm601_vm11 = vcmp.eq.s32.totalorder %v473_v15, 0  ;;  %v686_v57 = vsel %vm605_vm13, 0.0, %v625_v53  ;;  %6199 = vst [vmem:[#allocation14_spill] sm:$0xff] %v5164_v14  ;;  %v731_v10 = vsel %vm720_vm7, %v708_v62, %v709_v1  ;;  %v452_v15 = vand.u32 15, %v5176_v6  ;;  %v2572_v53 = vld [vmem:[#allocation4 + $0x28] sm:$0xff] }
  0x69   : > { %4258 = vmatmul.mubr.msk.f32.gmra.mrb[2].mxu0 %vm790_vm1, %v636_v60  ;;  %v682_v42 = vsel %vm601_vm11, 0.0, %v629_v33  ;;  %v5146_v60 = vadd.s32 24, %v4966_v22  ;;  %v466_v33 = vand.u32 15, %v392_v17  ;;  %v725_v37 = vsel %vm720_vm7, %v714_v24, %v715_v35 }
  0x6a   : > { %4260 = vmatprep.mubr.msk.f32.mxu0 %vm790_vm1, %v676_v61  ;;  %v707_v61 = vrot.slane %v4928_v11, 1  ;;  %vm695_vm2 = vcmp.eq.s32.totalorder %v452_v15, 15  ;;  %v724_v43 = vsel %vm720_vm7, %v715_v35, %v716_v41  ;;  %v736_v41 = vsel %vm720_vm7, %v719_v50, %v704_v18  ;;  %v2573_v18 = vld [vmem:[#allocation4 + $0x30] sm:$0xff] }
  0x6b   : > { %6198 = vst [vmem:[#allocation13_spill] sm:$0xff] %v5146_v60  ;;  %v424_v11 = vand.u32 15, %v5146_v60  ;;  %vm697_vm3 = vcmp.eq.s32.totalorder %v466_v33, 15  ;;  %v780_v47 = vsel %vm699_vm5, 0.0, %v724_v43  ;;  %vm2411_vm11 = vcmask 1043459  }
  0x6c   : > { %v733_v2 = vsel %vm720_vm7, %v706_v56, %v707_v61  ;;  %v732_v4 = vsel %vm720_vm7, %v707_v61, %v708_v62  ;;  %v4499_v56 = vpack.c.bf16 %v2574_v55, %v2573_v18  ;;  %vm2413_vm12 = vcmask 1044484  }
  0x6d   : > { %4261 = vmatmul.mubr.msk.f32.gmra.mrb[4].mxu0 %vm790_vm1, %v634_v5  ;;  %vm691_vm15 = vcmp.eq.s32.totalorder %v424_v11, 15  ;;  %v438_v5 = vand.u32 15, %v5164_v14  ;;  %vm2415_vm13 = vcmask 1045509  }
  0x6e   : > { %4263 = vmatprep.mubr.msk.f32.mxu0 %vm790_vm1, %v678_v7  ;;  %v772_v7 = vsel %vm691_vm15, 0.0, %v732_v4  ;;  %vm2419_vm15 = vcmask 1047559  }
  0x6f   : > { %vm693_vm0 = vcmp.eq.s32.totalorder %v438_v5, 15 }
  0x70   : > { %v774_v25 = vsel %vm693_vm0, 0.0, %v730_v12  ;;  %vm2575_vm0 = vcmask 261120  }
  0x71   : > { %4264 = vmatmul.mubr.msk.f32.gmra.mrb[6].mxu0 %vm790_vm1, %v632_v26  ;;  %v729_v26 = vsel %vm720_vm7, %v710_v27, %v711_v19 }
  0x72   : > { %4266 = vmatprep.mubr.msk.f32.mxu0 %vm790_vm1, %v680_v32  ;;  %v728_v32 = vsel %vm720_vm7, %v711_v19, %v712_v20 }
  0x73   : > { %v776_v29 = vsel %vm695_vm2, 0.0, %v728_v32 }
  0x75   : > { %4267 = vmatmul.mubr.msk.f32.gmra.mrb[8].mxu0 %vm790_vm1, %v630_v40  ;;  %v396_v40 = vadd.s32 104, %v4966_v22 }
  0x76   : > { %4269 = vmatprep.mubr.msk.f32.mxu0 %vm790_vm1, %v682_v42  ;;  %v778_v42 = vsel %vm697_vm3, 0.0, %v726_v36 }
  0x77   : > { %v494_v44 = vand.u32 15, %v396_v40 }
  0x79   : > { %4270 = vmatmul.mubr.msk.f32.gmra.mrb[10].mxu0 %vm790_vm1, %v628_v48  ;;  %vm701_vm6 = vcmp.eq.s32.totalorder %v494_v44, 15  ;;  %v508_v48 = vand.u32 15, %v398_v45 }
  0x7a   : > { %4272 = vmatprep.mubr.msk.f32.mxu0 %vm790_vm1, %v684_v51  ;;  %v782_v13 = vsel %vm701_vm6, 0.0, %v5054_v54  ;;  %v2571_v54 = vld [vmem:[#allocation4 + $0x20] sm:$0xff] }
  0x7b   : > { %vm703_vm8 = vcmp.eq.s32.totalorder %v508_v48, 15  ;;  %v4495_v3 = vpack.c.bf16 %v2572_v53, %v2571_v54 }
  0x7c   : > { %v784_v49 = vsel %vm703_vm8, 0.0, %v736_v41 }
  0x7d   : > { %4273 = vmatmul.mubr.msk.f32.gmra.mrb[12].mxu0 %vm790_vm1, %v626_v16  ;;  %4496 = vmatprep.subr.bf16.mxu0 %v4495_v3  ;;  %v4754_v16 = vmov 1983009808  }
  0x7e   : > { %4275 = vmatprep.mubr.msk.f32.mxu0 %vm790_vm1, %v686_v57 }
  0x81   : > { %4276 = vmatmul.mubr.msk.f32.gmra.mrb[14].mxu0 %vm790_vm1, %v624_v8 }
  0x82   : > { %4282 = vmatprep.mubr.msk.f32.mxu0 %vm790_vm1, %v735_v9 }
  0x85   : > { %4283 = vmatmul.mubr.msk.f32.vlgmr.msra.gmra.mrb[0].mxu0 %vm790_vm1, %v770_v0 }
  0x86   : > { %4285 = vmatprep.mubr.msk.f32.mxu0 %vm790_vm1, %v733_v2  ;;  %4498 = vmatpush3.bf16.msra.mxu0 %v4495_v3 }
  0x87   : > { %4500 = vmatprep.subr.bf16.mxu0 %v4499_v56 }
  0x89   : > { %4286 = vmatmul.mubr.msk.f32.gmra.mrb[2].mxu0 %vm790_vm1, %v772_v7 }
  0x8a   : > { %4288 = vmatprep.mubr.msk.f32.mxu0 %vm790_vm1, %v731_v10  ;;  %4502 = vmatpush3.bf16.msra.mxu0 %v4499_v56 }
  0x8d   : > { %4289 = vmatmul.mubr.msk.f32.gmra.mrb[4].mxu0 %vm790_vm1, %v774_v25 }
  0x8e   : > { %4291 = vmatprep.mubr.msk.f32.mxu0 %vm790_vm1, %v729_v26 }
  0x91   : > { %4292 = vmatmul.mubr.msk.f32.gmra.mrb[6].mxu0 %vm790_vm1, %v776_v29 }
  0x92   : > { %4294 = vmatprep.mubr.msk.f32.mxu0 %vm790_vm1, %v727_v30 }
  0x95   : > { %4295 = vmatmul.mubr.msk.f32.gmra.mrb[8].mxu0 %vm790_vm1, %v778_v42 }
  0x96   : > { %4297 = vmatprep.mubr.msk.f32.mxu0 %vm790_vm1, %v725_v37 }
  0x99   : > { %4298 = vmatmul.mubr.msk.f32.gmra.mrb[10].mxu0 %vm790_vm1, %v780_v47 }
  0x9a   : > { %4300 = vmatprep.mubr.msk.f32.mxu0 %vm790_vm1, %v5040_v46 }
  0x9d   : > { %4301 = vmatmul.mubr.msk.f32.gmra.mrb[12].mxu0 %vm790_vm1, %v782_v13 }
  0x9e   : > { %4303 = vmatprep.mubr.msk.f32.mxu0 %vm790_vm1, %v5067_v58  ;;  %v1456_v58 = vunpack.c.l.s4 %v4754_v16 }
  0xa0   : > { %v1457_v57 = vunpack.c.0.s8 %v1456_v58 }
  0xa1   : > { %4304 = vmatmul.mubr.msk.f32.gmra.mrb[14].mxu0 %vm790_vm1, %v784_v49  ;;  %vm1790_vm1 = vcmask 254976  }
  0xa2   : > { %v5244_v62 = vsub.s32 %v1457_v57, %v4966_v22 }
 0x122   : > { %v5230_v51 = vpop.f32.mrb[0].mxu1 }
 0x123   : > { %v5232_v46 = vpop.f32.mrb[1].mxu1 }
 0x126   : > { %v5234_v21 = vpop.f32.mrb[2].mxu1 }
 0x127   : > { %v5236_v50 = vpop.f32.mrb[3].mxu1 }
 0x158   : > { %v4284_v61 = vpop.f32.mrb[0].mxu0 }
 0x159   : > { %v1407_v8 = vadd.f32 %v4284_v61, %v5241_v59  ;;  %v1304_v9 = vpop.f32.mrb[1].mxu0 }
 0x15a   : > { %v1406_v63 = vadd.f32 %v5241_v59, %v1304_v9 }
 0x15b   : > { %v1423_v11 = vmax.f32 %v1407_v8, 0.0 }
 0x15c   : > { %v1422_v1 = vmax.f32 %v1406_v63, 0.0  ;;  %v4287_v27 = vpop.f32.mrb[2].mxu0 }
 0x15d   : > { %v1471_v0 = vcombine.high %v1423_v11, %v1423_v11  ;;  %v1478_v2 = vrot.slane %v1423_v11, %v5244_v62  ;;  %v1314_v4 = vpop.f32.mrb[3].mxu0  ;;  %v1409_v12 = vadd.f32 %v4287_v27, %v5241_v59 }
 0x15e   : > { %v1454_v5 = vcombine.high %v1422_v1, %v1422_v1  ;;  %v1461_v19 = vrot.slane %v1422_v1, %v5244_v62 }
 0x15f   : > { %v1485_v20 = vrot.slane %v1471_v0, %v5244_v62  ;;  %v1486_v7 = vcombine.high %v1478_v2, %v1478_v2  ;;  %v1819_v10 = vsel %vm1790_vm1, %v1478_v2, -inf  ;;  %v1425_v43 = vmax.f32 %v1409_v12, 0.0 }
 0x160   : > { %v1820_v15 = vrot.slane %v1819_v10, 4  ;;  %v1468_v17 = vrot.slane %v1454_v5, %v5244_v62  ;;  %v1469_v23 = vcombine.high %v1461_v19, %v1461_v19  ;;  %v1791_v24 = vsel %vm1790_vm1, %v1461_v19, -inf  ;;  %v5255_v25 = vpop.f32.mrb[4].mxu0 }
 0x161   : > { %v1487_v26 = vcombine.high %v1485_v20, %v1485_v20  ;;  %v1826_v32 = vsel %vm1790_vm1, %v1486_v7, -inf  ;;  %v1833_v33 = vsel %vm1790_vm1, %v1485_v20, -inf  ;;  %v1792_v34 = vrot.slane %v1791_v24, 4  ;;  %v5259_v35 = vpop.f32.mrb[5].mxu0 }
 0x162   : > { %v1821_v29 = vmax.f32 %v1819_v10, %v1820_v15  ;;  %v1827_v30 = vrot.slane %v1826_v32, 4  ;;  %v1834_v36 = vrot.slane %v1833_v33, 4  ;;  %v1470_v39 = vcombine.high %v1468_v17, %v1468_v17 }
 0x163   : > { %v1793_v40 = vmax.f32 %v1791_v24, %v1792_v34  ;;  %v1798_v42 = vsel %vm1790_vm1, %v1469_v23, -inf  ;;  %v1805_v37 = vsel %vm1790_vm1, %v1468_v17, -inf  ;;  %v1840_v48 = vsel %vm1790_vm1, %v1487_v26, -inf }
 0x164   : > { %v1822_v44 = vrot.slane %v1821_v29, 2  ;;  %v1828_v45 = vmax.f32 %v1826_v32, %v1827_v30  ;;  %v1835_v47 = vmax.f32 %v1833_v33, %v1834_v36  ;;  %v5264_v13 = vpop.f32.mrb[6].mxu0  ;;  %v1799_v49 = vrot.slane %v1798_v42, 4 }
 0x165   : > { %v1794_v41 = vrot.slane %v1793_v40, 2  ;;  %v1806_v54 = vrot.slane %v1805_v37, 4  ;;  %v1812_v53 = vsel %vm1790_vm1, %v1470_v39, -inf  ;;  %v5267_v3 = vpop.f32.mrb[7].mxu0  ;;  %v1841_v55 = vrot.slane %v1840_v48, 4 }
 0x166   : > { %v1829_v18 = vrot.slane %v1828_v45, 2  ;;  %v1800_v16 = vmax.f32 %v1798_v42, %v1799_v49  ;;  %v1813_v56 = vrot.slane %v1812_v53, 4  ;;  %v1823_v57 = vmax.f32 %v1821_v29, %v1822_v44 }
 0x167   : > { %v1807_v58 = vmax.f32 %v1805_v37, %v1806_v54  ;;  %v1836_v61 = vrot.slane %v1835_v47, 2  ;;  %v1505_v8 = vcombine.high %v1425_v43, %v1425_v43  ;;  %v1795_v11 = vmax.f32 %v1793_v40, %v1794_v41 }
 0x168   : > { %v5269_v9 = vpop.f32.mrb[8].mxu0  ;;  %v1830_v63 = vmax.f32 %v1828_v45, %v1829_v18  ;;  %v1801_v1 = vrot.slane %v1800_v16, 2  ;;  %v1814_v27 = vmax.f32 %v1812_v53, %v1813_v56  ;;  %v1512_v2 = vrot.slane %v1425_v43, %v5244_v62 }
 0x169   : > { %v5271_v0 = vpop.f32.mrb[9].mxu0  ;;  %v1408_v5 = vadd.f32 %v5241_v59, %v1314_v4  ;;  %v5275_v19 = vmax.f32 %v1840_v48, %v1841_v55  ;;  %v1808_v7 = vrot.slane %v1807_v58, 2  ;;  %v1824_v12 = vrot.slane %v1823_v57, 1 }
 0x16a   : > { %v1802_v20 = vmax.f32 %v1800_v16, %v1801_v1  ;;  %v1815_v10 = vrot.slane %v1814_v27, 2  ;;  %v1519_v15 = vrot.slane %v1505_v8, %v5244_v62  ;;  %v1520_v17 = vcombine.high %v1512_v2, %v1512_v2 }
 0x16b   : > { %v1875_v23 = vsel %vm1790_vm1, %v1512_v2, -inf  ;;  %v1831_v26 = vrot.slane %v1830_v63, 1  ;;  %v5281_v32 = vmax.f32 %v1835_v47, %v1836_v61  ;;  %v1796_v33 = vrot.slane %v1795_v11, 1 }
 0x16c   : > { %v5279_v24 = vpop.f32.mrb[10].mxu0  ;;  %v1876_v34 = vrot.slane %v1875_v23, 4  ;;  %v1521_v4 = vcombine.high %v1519_v15, %v1519_v15  ;;  %v1882_v30 = vsel %vm1790_vm1, %v1520_v17, -inf  ;;  %v1889_v36 = vsel %vm1790_vm1, %v1519_v15, -inf }
 0x16d   : > { %v5283_v29 = vpop.f32.mrb[11].mxu0  ;;  %v1424_v39 = vmax.f32 %v1408_v5, 0.0  ;;  %v1803_v40 = vrot.slane %v1802_v20, 1  ;;  %v1809_v42 = vmax.f32 %v1807_v58, %v1808_v7  ;;  %v1816_v37 = vmax.f32 %v1814_v27, %v1815_v10 }
 0x16e   : > { %v1877_v43 = vmax.f32 %v1875_v23, %v1876_v34  ;;  %v1883_v44 = vrot.slane %v1882_v30, 4  ;;  %v1890_v45 = vrot.slane %v1889_v36, 4  ;;  %v1896_v48 = vsel %vm1790_vm1, %v1521_v4, -inf }
 0x16f   : > { %v1488_v47 = vcombine.high %v1424_v39, %v1424_v39  ;;  %v5290_v49 = vmax.f32 %v1823_v57, %v1824_v12  ;;  %v1897_v18 = vrot.slane %v1896_v48, 4  ;;  %v1495_v56 = vrot.slane %v1424_v39, %v5244_v62 }
 0x170   : > { %v5288_v41 = vpop.f32.mrb[12].mxu0  ;;  %v1878_v53 = vrot.slane %v1877_v43, 2  ;;  %v1884_v16 = vmax.f32 %v1882_v30, %v1883_v44  ;;  %v1891_v58 = vmax.f32 %v1889_v36, %v1890_v45  ;;  %v5297_v8 = vmax.f32 %v1830_v63, %v1831_v26 }
 0x171   : > { %v5293_v55 = vpop.f32.mrb[13].mxu0  ;;  %v1502_v61 = vrot.slane %v1488_v47, %v5244_v62  ;;  %v1797_v1 = vmax.f32 %v1795_v11, %v1796_v33  ;;  %v1810_v27 = vrot.slane %v1809_v42, 1  ;;  %v1898_v2 = vmax.f32 %v1896_v48, %v1897_v18 }
 0x172   : > { %v1804_v57 = vmax.f32 %v1802_v20, %v1803_v40  ;;  %v1817_v5 = vrot.slane %v1816_v37, 1  ;;  %v1503_v7 = vcombine.high %v1495_v56, %v1495_v56  ;;  %v1879_v15 = vmax.f32 %v1877_v43, %v1878_v53 }
 0x173   : > { %v1504_v10 = vcombine.high %v1502_v61, %v1502_v61  ;;  %v1885_v17 = vrot.slane %v1884_v16, 2  ;;  %v1847_v23 = vsel %vm1790_vm1, %v1495_v56, -inf  ;;  %v1861_v34 = vsel %vm1790_vm1, %v1502_v61, -inf }
 0x174   : > { %v5299_v12 = vpop.f32.mrb[14].mxu0  ;;  %v1892_v30 = vrot.slane %v1891_v58, 2  ;;  %v1848_v63 = vrot.slane %v1847_v23, 4  ;;  %v1854_v11 = vsel %vm1790_vm1, %v1503_v7, -inf  ;;  %v1411_v20 = vadd.f32 %v5255_v25, %v5241_v59 }
 0x175   : > { %v5303_v4 = vpop.f32.mrb[15].mxu0  ;;  %v5308_v26 = vmax.f32 %v1809_v42, %v1810_v27  ;;  %v1899_v33 = vrot.slane %v1898_v2, 2  ;;  %v1855_v36 = vrot.slane %v1854_v11, 4  ;;  %v1862_v39 = vrot.slane %v1861_v34, 4 }
 0x176   : > { %v5310_v40 = vmax.f32 %v1816_v37, %v1817_v5  ;;  %v1849_v43 = vmax.f32 %v1847_v23, %v1848_v63  ;;  %v1868_v44 = vsel %vm1790_vm1, %v1504_v10, -inf  ;;  %v1410_v45 = vadd.f32 %v5241_v59, %v5259_v35 }
 0x177   : > { %v1886_v48 = vmax.f32 %v1884_v16, %v1885_v17  ;;  %v1856_v47 = vmax.f32 %v1854_v11, %v1855_v36  ;;  %v1863_v53 = vmax.f32 %v1861_v34, %v1862_v39  ;;  %v1869_v18 = vrot.slane %v1868_v44, 4 }
 0x178   : > { %v1880_v56 = vrot.slane %v1879_v15, 1  ;;  %v1893_v61 = vmax.f32 %v1891_v58, %v1892_v30  ;;  %v1850_v25 = vrot.slane %v1849_v43, 2  ;;  %v1427_v42 = vmax.f32 %v1411_v20, 0.0 }
 0x179   : > { %v5315_v27 = vmax.f32 %v1898_v2, %v1899_v33  ;;  %v1857_v7 = vrot.slane %v1856_v47, 2  ;;  %v1864_v54 = vrot.slane %v1863_v53, 2  ;;  %v1870_v37 = vmax.f32 %v1868_v44, %v1869_v18 }
 0x17a   : > { %v1851_v5 = vmax.f32 %v1849_v43, %v1850_v25  ;;  %v1539_v23 = vcombine.high %v1427_v42, %v1427_v42  ;;  %v1546_v10 = vrot.slane %v1427_v42, %v5244_v62  ;;  %v1426_v63 = vmax.f32 %v1410_v45, 0.0 }
 0x17b   : > { %v5319_v35 = vsel %vm2407_vm9, %v1804_v57, %v1797_v1  ;;  %v1887_v16 = vrot.slane %v1886_v48, 1  ;;  %v1858_v17 = vmax.f32 %v1856_v47, %v1857_v7  ;;  %v1865_v34 = vmax.f32 %v1863_v53, %v1864_v54 }
 0x17c   : > { %v1871_v11 = vrot.slane %v1870_v37, 2  ;;  %v1553_v58 = vrot.slane %v1539_v23, %v5244_v62  ;;  %v1554_v30 = vcombine.high %v1546_v10, %v1546_v10  ;;  %v1931_v2 = vsel %vm1790_vm1, %v1546_v10, -inf }
 0x17d   : > { %v5323_v20 = vmax.f32 %v1879_v15, %v1880_v56  ;;  %v1894_v33 = vrot.slane %v1893_v61, 1  ;;  %v1932_v39 = vrot.slane %v1931_v2, 4  ;;  %v1852_v43 = vrot.slane %v1851_v5, 1 }
 0x17e   : > { %v1938_v44 = vsel %vm1790_vm1, %v1554_v30, -inf  ;;  %v1945_v1 = vsel %vm1790_vm1, %v1553_v58, -inf  ;;  %v1522_v57 = vcombine.high %v1426_v63, %v1426_v63  ;;  %v5328_v45 = vmax.f32 %v1886_v48, %v1887_v16 }
 0x17f   : > { %v1859_v54 = vrot.slane %v1858_v17, 1  ;;  %v1866_v47 = vrot.slane %v1865_v34, 1  ;;  %v1933_v53 = vmax.f32 %v1931_v2, %v1932_v39  ;;  %v1872_v18 = vmax.f32 %v1870_v37, %v1871_v11 }
 0x180   : > { %v1939_v25 = vrot.slane %v1938_v44, 4  ;;  %v1946_v42 = vrot.slane %v1945_v1, 4  ;;  %v1529_v15 = vrot.slane %v1426_v63, %v5244_v62  ;;  %v5331_v56 = vmax.f32 %v1893_v61, %v1894_v33 }
 0x181   : > { %v1555_v7 = vcombine.high %v1553_v58, %v1553_v58  ;;  %v1934_v23 = vrot.slane %v1933_v53, 2  ;;  %v1413_v10 = vadd.f32 %v5264_v13, %v5241_v59  ;;  %v1853_v30 = vmax.f32 %v1851_v5, %v1852_v43 }
 0x182   : > { %6201 = vst [vmem:[#allocation16_spill] sm:$0xff] %v5331_v56  ;;  %v1940_v36 = vmax.f32 %v1938_v44, %v1939_v25  ;;  %v1947_v6 = vmax.f32 %v1945_v1, %v1946_v42  ;;  %v1536_v48 = vrot.slane %v1522_v57, %v5244_v62  ;;  %v1860_v16 = vmax.f32 %v1858_v17, %v1859_v54 }
 0x183   : > { %v1867_v38 = vmax.f32 %v1865_v34, %v1866_v47  ;;  %v1537_v2 = vcombine.high %v1529_v15, %v1529_v15  ;;  %v1903_v37 = vsel %vm1790_vm1, %v1529_v15, -inf  ;;  %v1873_v11 = vrot.slane %v1872_v18, 1 }
 0x184   : > { %v1935_v39 = vmax.f32 %v1933_v53, %v1934_v23  ;;  %v1538_v63 = vcombine.high %v1536_v48, %v1536_v48  ;;  %v1904_v61 = vrot.slane %v1903_v37, 4  ;;  %v1952_v58 = vsel %vm1790_vm1, %v1555_v7, -inf }
 0x185   : > { %v1910_v33 = vsel %vm1790_vm1, %v1537_v2, -inf  ;;  %v1917_v13 = vsel %vm1790_vm1, %v1536_v48, -inf  ;;  %v1429_v5 = vmax.f32 %v1413_v10, 0.0  ;;  %v1941_v43 = vrot.slane %v1940_v36, 2 }
 0x186   : > { %v1948_v44 = vrot.slane %v1947_v6, 2  ;;  %v1905_v1 = vmax.f32 %v1903_v37, %v1904_v61  ;;  %v1911_v17 = vrot.slane %v1910_v33, 4  ;;  %v2421_v34 = vsel %vm2407_vm9, %v1860_v16, %v1853_v30 }
 0x187   : > { %v1918_v57 = vrot.slane %v1917_v13, 4  ;;  %v1924_v54 = vsel %vm1790_vm1, %v1538_v63, -inf  ;;  %v1573_v47 = vcombine.high %v1429_v5, %v1429_v5  ;;  %v1936_v53 = vrot.slane %v1935_v39, 1 }
 0x188   : > { %v1953_v25 = vrot.slane %v1952_v58, 4  ;;  %v1906_v42 = vrot.slane %v1905_v1, 2  ;;  %v1912_v15 = vmax.f32 %v1910_v33, %v1911_v17  ;;  %v1925_v23 = vrot.slane %v1924_v54, 4 }
 0x189   : > { %v1919_v7 = vmax.f32 %v1917_v13, %v1918_v57  ;;  %v1580_v48 = vrot.slane %v1429_v5, %v5244_v62  ;;  %v1587_v10 = vrot.slane %v1573_v47, %v5244_v62  ;;  %v1942_v2 = vmax.f32 %v1940_v36, %v1941_v43 }
 0x18a   : > { %v5344_v14 = vmax.f32 %v1947_v6, %v1948_v44  ;;  %v1907_v37 = vmax.f32 %v1905_v1, %v1906_v42  ;;  %v1913_v61 = vrot.slane %v1912_v15, 2  ;;  %v1926_v16 = vmax.f32 %v1924_v54, %v1925_v23 }
 0x18b   : > { %v1920_v30 = vrot.slane %v1919_v7, 2  ;;  %v1588_v31 = vcombine.high %v1580_v48, %v1580_v48  ;;  %v1412_v63 = vadd.f32 %v5241_v59, %v5267_v3  ;;  %v1589_v28 = vcombine.high %v1587_v10, %v1587_v10 }
 0x18c   : > { %6202 = vst [vmem:[#allocation17_spill] sm:$0xff] %v5344_v14  ;;  %v1914_v60 = vmax.f32 %v1912_v15, %v1913_v61  ;;  %v1987_v33 = vsel %vm1790_vm1, %v1580_v48, -inf  ;;  %v2001_v13 = vsel %vm1790_vm1, %v1587_v10, -inf  ;;  %v1927_v17 = vrot.slane %v1926_v16, 2 }
 0x18d   : > { %v1921_v5 = vmax.f32 %v1919_v7, %v1920_v30  ;;  %v1988_v57 = vrot.slane %v1987_v33, 4  ;;  %v1994_v6 = vsel %vm1790_vm1, %v1588_v31, -inf  ;;  %v1943_v36 = vrot.slane %v1942_v2, 1 }
 0x18e   : > { %v1915_v43 = vrot.slane %v1914_v60, 1  ;;  %v1995_v44 = vrot.slane %v1994_v6, 4  ;;  %v2002_v1 = vrot.slane %v2001_v13, 4  ;;  %v5351_v54 = vmax.f32 %v1872_v18, %v1873_v11 }
 0x18f   : > { %v5354_v47 = vsel %vm2409_vm10, %v1867_v38, %v2421_v34  ;;  %v1908_v3 = vrot.slane %v1907_v37, 1  ;;  %v1989_v42 = vmax.f32 %v1987_v33, %v1988_v57  ;;  %v1922_v15 = vrot.slane %v1921_v5, 1 }
 0x190   : > { %v5356_v23 = vmax.f32 %v1926_v16, %v1927_v17  ;;  %v1996_v48 = vmax.f32 %v1994_v6, %v1995_v44  ;;  %v2008_v7 = vsel %vm1790_vm1, %v1589_v28, -inf  ;;  %v5359_v10 = vmax.f32 %v1935_v39, %v1936_v53 }
 0x191   : > { %v5361_v31 = vmax.f32 %v1952_v58, %v1953_v25  ;;  %v2003_v61 = vmax.f32 %v2001_v13, %v2002_v1  ;;  %v1428_v30 = vmax.f32 %v1412_v63, 0.0  ;;  %v5363_v52 = vmax.f32 %v1942_v2, %v1943_v36 }
 0x192   : > { %6203 = vst [vmem:[#allocation18_spill] sm:$0xff] %v5359_v10  ;;  %v1916_v38 = vmax.f32 %v1914_v60, %v1915_v43  ;;  %v1990_v11 = vrot.slane %v1989_v42, 2  ;;  %v1909_v34 = vmax.f32 %v1907_v37, %v1908_v3  ;;  %v2009_v33 = vrot.slane %v2008_v7, 4 }
 0x193   : > { %6204 = vst [vmem:[#allocation19_spill] sm:$0xff] %v5363_v52  ;;  %v1556_v57 = vcombine.high %v1428_v30, %v1428_v30  ;;  %v1563_v16 = vrot.slane %v1428_v30, %v5244_v62  ;;  %v5367_v17 = vmax.f32 %v1921_v5, %v1922_v15  ;;  %v1929_v28 = vrot.slane %v5356_v23, 1 }
 0x194   : > { %v1997_v39 = vrot.slane %v1996_v48, 2  ;;  %v1415_v58 = vadd.f32 %v5269_v9, %v5241_v59  ;;  %v2004_v53 = vrot.slane %v2003_v61, 2  ;;  %v5375_v37 = vsel %vm2407_vm9, %v1916_v38, %v1909_v34 }
 0x195   : > { %v1570_v25 = vrot.slane %v1556_v57, %v5244_v62  ;;  %v1571_v2 = vcombine.high %v1563_v16, %v1563_v16  ;;  %v1959_v60 = vsel %vm1790_vm1, %v1563_v16, -inf  ;;  %v1991_v63 = vmax.f32 %v1989_v42, %v1990_v11 }
 0x196   : > { %v1960_v13 = vrot.slane %v1959_v60, 4  ;;  %v1431_v6 = vmax.f32 %v1415_v58, 0.0  ;;  %v1414_v9 = vadd.f32 %v5241_v59, %v5271_v0  ;;  %v1998_v44 = vmax.f32 %v1996_v48, %v1997_v39 }
 0x197   : > { %v1572_v5 = vcombine.high %v1570_v25, %v1570_v25  ;;  %v1966_v36 = vsel %vm1790_vm1, %v1571_v2, -inf  ;;  %v1973_v43 = vsel %vm1790_vm1, %v1570_v25, -inf  ;;  %v5381_v30 = vmax.f32 %v2003_v61, %v2004_v53 }
 0x198   : > { %v1961_v1 = vmax.f32 %v1959_v60, %v1960_v13  ;;  %v1967_v3 = vrot.slane %v1966_v36, 4  ;;  %v1974_v15 = vrot.slane %v1973_v43, 4  ;;  %v1607_v34 = vcombine.high %v1431_v6, %v1431_v6 }
 0x199   : > { %v1980_v38 = vsel %vm1790_vm1, %v1572_v5, -inf  ;;  %v1614_v42 = vrot.slane %v1431_v6, %v5244_v62  ;;  %v1430_v48 = vmax.f32 %v1414_v9, 0.0  ;;  %v1992_v22 = vrot.slane %v1991_v63, 1 }
 0x19a   : > { %v1962_v11 = vrot.slane %v1961_v1, 2  ;;  %v1968_v57 = vmax.f32 %v1966_v36, %v1967_v3  ;;  %v1975_v16 = vmax.f32 %v1973_v43, %v1974_v15  ;;  %v1981_v58 = vrot.slane %v1980_v38, 4 }
 0x19b   : > { %v1621_v25 = vrot.slane %v1607_v34, %v5244_v62  ;;  %v1622_v2 = vcombine.high %v1614_v42, %v1614_v42  ;;  %v2043_v0 = vsel %vm1790_vm1, %v1614_v42, -inf  ;;  %v1999_v36 = vrot.slane %v1998_v44, 1 }
 0x19c   : > { %v1963_v39 = vmax.f32 %v1961_v1, %v1962_v11  ;;  %v1969_v60 = vrot.slane %v1968_v57, 2  ;;  %v1976_v13 = vrot.slane %v1975_v16, 2  ;;  %v1982_v61 = vmax.f32 %v1980_v38, %v1981_v58 }
 0x19d   : > { %v1623_v53 = vcombine.high %v1621_v25, %v1621_v25  ;;  %v2044_v18 = vrot.slane %v2043_v0, 4  ;;  %v2050_v5 = vsel %vm1790_vm1, %v1622_v2, -inf  ;;  %v2057_v6 = vsel %vm1790_vm1, %v1621_v25, -inf }
 0x19e   : > { %v1970_v43 = vmax.f32 %v1968_v57, %v1969_v60  ;;  %v1977_v3 = vmax.f32 %v1975_v16, %v1976_v13  ;;  %v1983_v15 = vrot.slane %v1982_v61, 2  ;;  %v2051_v52 = vrot.slane %v2050_v5, 4 }
 0x19f   : > { %v2045_v34 = vmax.f32 %v2043_v0, %v2044_v18  ;;  %v2058_v10 = vrot.slane %v2057_v6, 4  ;;  %v5389_v42 = vmax.f32 %v2008_v7, %v2009_v33  ;;  %v1964_v9 = vrot.slane %v1963_v39, 1 }
 0x1a0   : > { %v2064_v1 = vsel %vm1790_vm1, %v1623_v53, -inf  ;;  %v1590_v38 = vcombine.high %v1430_v48, %v1430_v48  ;;  %v1971_v11 = vrot.slane %v1970_v43, 1  ;;  %v1978_v58 = vrot.slane %v1977_v3, 1 }
 0x1a1   : > { %6205 = vst [vmem:[#allocation20_spill] sm:$0xff] %v5389_v42  ;;  %v2046_v14 = vrot.slane %v2045_v34, 2  ;;  %v2052_v2 = vmax.f32 %v2050_v5, %v2051_v52  ;;  %v5393_v25 = vmax.f32 %v5356_v23, %v1929_v28  ;;  %v5395_v56 = vmax.f32 %v1991_v63, %v1992_v22 }
 0x1a2   : > { %v1597_v18 = vrot.slane %v1430_v48, %v5244_v62  ;;  %v5399_v16 = vmax.f32 %v1998_v44, %v1999_v36  ;;  %v1984_v7 = vmax.f32 %v1982_v61, %v1983_v15  ;;  %v2059_v0 = vmax.f32 %v2057_v6, %v2058_v10 }
 0x1a3   : > { %6206 = vst [vmem:[#allocation21_spill] sm:$0xff] %v5395_v56  ;;  %v2047_v33 = vmax.f32 %v2045_v34, %v2046_v14  ;;  %v1965_v60 = vmax.f32 %v1963_v39, %v1964_v9  ;;  %v2065_v13 = vrot.slane %v2064_v1, 4  ;;  %v1604_v53 = vrot.slane %v1590_v38, %v5244_v62 }
 0x1a4   : > { %6207 = vst [vmem:[#allocation22_spill] sm:$0xff] %v5399_v16  ;;  %v1605_v42 = vcombine.high %v1597_v18, %v1597_v18  ;;  %v1972_v52 = vmax.f32 %v1970_v43, %v1971_v11  ;;  %v5402_v5 = vmax.f32 %v1977_v3, %v1978_v58  ;;  %v2053_v23 = vrot.slane %v2052_v2, 2 }
 0x1a5   : > { %v2015_v22 = vsel %vm1790_vm1, %v1597_v18, -inf  ;;  %v1606_v28 = vcombine.high %v1604_v53, %v1604_v53  ;;  %v2029_v44 = vsel %vm1790_vm1, %v1604_v53, -inf  ;;  %v1985_v61 = vrot.slane %v1984_v7, 1 }
 0x1a6   : > { %v2016_v63 = vrot.slane %v2015_v22, 4  ;;  %v2022_v48 = vsel %vm1790_vm1, %v1605_v42, -inf  ;;  %v2048_v14 = vrot.slane %v2047_v33, 1  ;;  %v2060_v10 = vrot.slane %v2059_v0, 2 }
 0x1a7   : > { %v2023_v39 = vrot.slane %v2022_v48, 4  ;;  %v2030_v36 = vrot.slane %v2029_v44, 4  ;;  %v2036_v15 = vsel %vm1790_vm1, %v1606_v28, -inf  ;;  %v1417_v43 = vadd.f32 %v5279_v24, %v5241_v59 }
 0x1a8   : > { %v2017_v6 = vmax.f32 %v2015_v22, %v2016_v63  ;;  %v2054_v3 = vmax.f32 %v2052_v2, %v2053_v23  ;;  %v2037_v9 = vrot.slane %v2036_v15, 4  ;;  %v1416_v38 = vadd.f32 %v5241_v59, %v5283_v29 }
 0x1a9   : > { %v2024_v34 = vmax.f32 %v2022_v48, %v2023_v39  ;;  %v2031_v11 = vmax.f32 %v2029_v44, %v2030_v36  ;;  %v1433_v58 = vmax.f32 %v1417_v43, 0.0  ;;  %v4593_v18 = vadd.f32 %v5288_v41, %v5230_v51 }
 0x1aa   : > { %v2018_v42 = vrot.slane %v2017_v6, 2  ;;  %v2038_v22 = vmax.f32 %v2036_v15, %v2037_v9  ;;  %v1432_v63 = vmax.f32 %v1416_v38, 0.0  ;;  %v5416_v28 = vadd.f32 %v5293_v55, %v5232_v46 }
 0x1ab   : > { %v2025_v53 = vrot.slane %v2024_v34, 2  ;;  %v2032_v2 = vrot.slane %v2031_v11, 2  ;;  %v1641_v23 = vcombine.high %v1433_v58, %v1433_v58  ;;  %v1648_v48 = vrot.slane %v1433_v58, %v5244_v62 }
 0x1ac   : > { %v2019_v24 = vmax.f32 %v2017_v6, %v2018_v42  ;;  %v5419_v39 = vmax.f32 %v1984_v7, %v1985_v61  ;;  %v5421_v29 = vmax.f32 %v2064_v1, %v2065_v13  ;;  %v1624_v36 = vcombine.high %v1432_v63, %v1432_v63 }
 0x1ad   : > { %v2026_v44 = vmax.f32 %v2024_v34, %v2025_v53  ;;  %v5424_v51 = vsel %vm2407_vm9, %v1972_v52, %v1965_v60  ;;  %v5426_v41 = vmax.f32 %v2059_v0, %v2060_v10  ;;  %v1655_v15 = vrot.slane %v1641_v23, %v5244_v62 }
 0x1ae   : > { %6208 = vst [vmem:[#allocation23_spill] sm:$0xff] %v5421_v29  ;;  %v1656_v46 = vcombine.high %v1648_v48, %v1648_v48  ;;  %v2055_v55 = vrot.slane %v2054_v3, 1  ;;  %v2039_v6 = vrot.slane %v2038_v22, 2  ;;  %v2099_v43 = vsel %vm1790_vm1, %v1648_v48, -inf }
 0x1af   : > { %6209 = vst [vmem:[#allocation24_spill] sm:$0xff] %v5426_v41  ;;  %v1631_v9 = vrot.slane %v1432_v63, %v5244_v62  ;;  %v5431_v7 = vmax.f32 %v2047_v33, %v2048_v14  ;;  %v2020_v1 = vrot.slane %v2019_v24, 1  ;;  %v2033_v13 = vmax.f32 %v2031_v11, %v2032_v2 }
 0x1b0   : > { %v2100_v61 = vrot.slane %v2099_v43, 4  ;;  %v2027_v34 = vrot.slane %v2026_v44, 1  ;;  %v2106_v60 = vsel %vm1790_vm1, %v1656_v46, -inf  ;;  %v2113_v0 = vsel %vm1790_vm1, %v1655_v15, -inf }
 0x1b1   : > { %6210 = vst [vmem:[#allocation25_spill] sm:$0xff] %v5431_v7  ;;  %v1638_v52 = vrot.slane %v1624_v36, %v5244_v62  ;;  %v1657_v10 = vcombine.high %v1655_v15, %v1655_v15  ;;  %v2107_v42 = vrot.slane %v2106_v60, 4  ;;  %v2114_v58 = vrot.slane %v2113_v0, 4 }
 0x1b2   : > { %v2101_v38 = vmax.f32 %v2099_v43, %v2100_v61  ;;  %v5436_v53 = vmax.f32 %v2054_v3, %v2055_v55  ;;  %v2040_v33 = vmax.f32 %v2038_v22, %v2039_v6  ;;  %v1639_v14 = vcombine.high %v1631_v9, %v1631_v9 }
 0x1b3   : > { %v2021_v23 = vmax.f32 %v2019_v24, %v2020_v1  ;;  %v2108_v2 = vmax.f32 %v2106_v60, %v2107_v42  ;;  %v2115_v48 = vmax.f32 %v2113_v0, %v2114_v58  ;;  %v1640_v57 = vcombine.high %v1638_v52, %v1638_v52 }
 0x1b4   : > { %6211 = vst [vmem:[#allocation26_spill] sm:$0xff] %v5436_v53  ;;  %v2102_v11 = vrot.slane %v2101_v38, 2  ;;  %v2071_v46 = vsel %vm1790_vm1, %v1631_v9, -inf  ;;  %v2078_v7 = vsel %vm1790_vm1, %v1639_v14, -inf  ;;  %v2085_v36 = vsel %vm1790_vm1, %v1638_v52, -inf }
 0x1b5   : > { %v2028_v15 = vmax.f32 %v2026_v44, %v2027_v34  ;;  %v2034_v43 = vrot.slane %v2033_v13, 1  ;;  %v2109_v61 = vrot.slane %v2108_v2, 2  ;;  %v2120_v3 = vsel %vm1790_vm1, %v1657_v10, -inf }
 0x1b6   : > { %v2072_v55 = vrot.slane %v2071_v46, 4  ;;  %v2079_v63 = vrot.slane %v2078_v7, 4  ;;  %v2086_v22 = vrot.slane %v2085_v36, 4  ;;  %v2092_v24 = vsel %vm1790_vm1, %v1640_v57, -inf }
 0x1b7   : > { %v2041_v6 = vrot.slane %v2040_v33, 1  ;;  %v2103_v1 = vmax.f32 %v2101_v38, %v2102_v11  ;;  %v2116_v60 = vrot.slane %v2115_v48, 2  ;;  %v2093_v0 = vrot.slane %v2092_v24, 4 }
 0x1b8   : > { %v2073_v42 = vmax.f32 %v2071_v46, %v2072_v55  ;;  %v2080_v9 = vmax.f32 %v2078_v7, %v2079_v63  ;;  %v2087_v58 = vmax.f32 %v2085_v36, %v2086_v22  ;;  %v1419_v14 = vadd.f32 %v4593_v18, %v5241_v59 }
 0x1b9   : > { %v5445_v52 = vmax.f32 %v2033_v13, %v2034_v43  ;;  %v2110_v44 = vmax.f32 %v2108_v2, %v2109_v61  ;;  %v2121_v34 = vrot.slane %v2120_v3, 4  ;;  %v2094_v53 = vmax.f32 %v2092_v24, %v2093_v0 }
 0x1ba   : > { %v2074_v10 = vrot.slane %v2073_v42, 2  ;;  %v2081_v41 = vrot.slane %v2080_v9, 2  ;;  %v2088_v16 = vrot.slane %v2087_v58, 2  ;;  %v1435_v29 = vmax.f32 %v1419_v14, 0.0 }
 0x1bb   : > { %v2104_v56 = vrot.slane %v2103_v1, 1  ;;  %v2095_v57 = vrot.slane %v2094_v53, 2  ;;  %v1418_v38 = vadd.f32 %v5416_v28, %v5241_v59  ;;  %v4595_v7 = vadd.f32 %v5299_v12, %v5234_v21 }
 0x1bc   : > { %v5451_v63 = vmax.f32 %v2115_v48, %v2116_v60  ;;  %v2075_v18 = vmax.f32 %v2073_v42, %v2074_v10  ;;  %v2082_v13 = vmax.f32 %v2080_v9, %v2081_v41  ;;  %v1675_v11 = vcombine.high %v1435_v29, %v1435_v29 }
 0x1bd   : > { %v5453_v2 = vmax.f32 %v2040_v33, %v2041_v6  ;;  %v5456_v46 = vsel %vm2407_vm9, %v2028_v15, %v2021_v23  ;;  %v1682_v36 = vrot.slane %v1435_v29, %v5244_v62  ;;  %v1434_v43 = vmax.f32 %v1418_v38, 0.0 }
 0x1be   : > { %v2111_v61 = vrot.slane %v2110_v44, 1  ;;  %v2089_v55 = vmax.f32 %v2087_v58, %v2088_v16  ;;  %v2096_v22 = vmax.f32 %v2094_v53, %v2095_v57  ;;  %v1689_v28 = vrot.slane %v1675_v11, %v5244_v62 }
 0x1bf   : > { %v2076_v24 = vrot.slane %v2075_v18, 1  ;;  %v1690_v21 = vcombine.high %v1682_v36, %v1682_v36  ;;  %v2155_v12 = vsel %vm1790_vm1, %v1682_v36, -inf  ;;  %v1658_v48 = vcombine.high %v1434_v43, %v1434_v43 }
 0x1c0   : > { %v5461_v41 = vmax.f32 %v2103_v1, %v2104_v56  ;;  %v5464_v6 = vmax.f32 %v2120_v3, %v2121_v34  ;;  %v2083_v23 = vrot.slane %v2082_v13, 1  ;;  %v2156_v15 = vrot.slane %v2155_v12, 4 }
 0x1c1   : > { %v2162_v29 = vsel %vm1790_vm1, %v1690_v21, -inf  ;;  %v2169_v16 = vsel %vm1790_vm1, %v1689_v28, -inf  ;;  %v1421_v53 = vadd.f32 %v4595_v7, %v5241_v59  ;;  %v5469_v60 = vmax.f32 %v2110_v44, %v2111_v61 }
 0x1c2   : > { %6212 = vst [vmem:[#allocation27_spill] sm:$0xff] %v5461_v41  ;;  %v2090_v0 = vrot.slane %v2089_v55, 1  ;;  %v2097_v42 = vrot.slane %v2096_v22, 1  ;;  %v2163_v9 = vrot.slane %v2162_v29, 4  ;;  %v2077_v58 = vmax.f32 %v2075_v18, %v2076_v24 }
 0x1c3   : > { %6213 = vst [vmem:[#allocation28_spill] sm:$0xff] %v5469_v60  ;;  %v2157_v56 = vmax.f32 %v2155_v12, %v2156_v15  ;;  %v1665_v1 = vrot.slane %v1434_v43, %v5244_v62  ;;  %v1672_v3 = vrot.slane %v1658_v48, %v5244_v62  ;;  %v2084_v14 = vmax.f32 %v2082_v13, %v2083_v23 }
 0x1c4   : > { %v2164_v34 = vmax.f32 %v2162_v29, %v2163_v9  ;;  %v2170_v10 = vrot.slane %v2169_v16, 4  ;;  %v4596_v57 = vadd.f32 %v5303_v4, %v5236_v50  ;;  %v1437_v7 = vmax.f32 %v1421_v53, 0.0 }
 0x1c5   : > { %v1673_v38 = vcombine.high %v1665_v1, %v1665_v1  ;;  %v1674_v11 = vcombine.high %v1672_v3, %v1672_v3  ;;  %v2127_v44 = vsel %vm1790_vm1, %v1665_v1, -inf  ;;  %v5476_v36 = vmax.f32 %v2089_v55, %v2090_v0 }
 0x1c6   : > { %v2158_v61 = vrot.slane %v2157_v56, 2  ;;  %v2128_v18 = vrot.slane %v2127_v44, 4  ;;  %v2141_v24 = vsel %vm1790_vm1, %v1672_v3, -inf  ;;  %v1691_v43 = vcombine.high %v1689_v28, %v1689_v28 }
 0x1c7   : > { %v2134_v21 = vsel %vm1790_vm1, %v1673_v38, -inf  ;;  %v2142_v13 = vrot.slane %v2141_v24, 4  ;;  %v2148_v12 = vsel %vm1790_vm1, %v1674_v11, -inf  ;;  %v5481_v48 = vmax.f32 %v2096_v22, %v2097_v42 }
 0x1c8   : > { %v2171_v50 = vmax.f32 %v2169_v16, %v2170_v10  ;;  %v2129_v4 = vmax.f32 %v2127_v44, %v2128_v18  ;;  %v2135_v23 = vrot.slane %v2134_v21, 4  ;;  %v2165_v15 = vrot.slane %v2164_v34, 2 }
 0x1c9   : > { %v2143_v29 = vmax.f32 %v2141_v24, %v2142_v13  ;;  %v2149_v53 = vrot.slane %v2148_v12, 4  ;;  %v1709_v55 = vcombine.high %v1437_v7, %v1437_v7  ;;  %v2159_v0 = vmax.f32 %v2157_v56, %v2158_v61 }
 0x1ca   : > { %v2130_v9 = vrot.slane %v2129_v4, 2  ;;  %v2136_v1 = vmax.f32 %v2134_v21, %v2135_v23  ;;  %v1716_v3 = vrot.slane %v1437_v7, %v5244_v62  ;;  %v5485_v28 = vsel %vm1790_vm1, %v1691_v43, -inf }
 0x1cb   : > { %v2144_v38 = vrot.slane %v2143_v29, 2  ;;  %v2150_v33 = vmax.f32 %v2148_v12, %v2149_v53  ;;  %v1723_v22 = vrot.slane %v1709_v55, %v5244_v62  ;;  %v5489_v44 = vmax.f32 %v2164_v34, %v2165_v15 }
 0x1cc   : > { %v2131_v42 = vmax.f32 %v2129_v4, %v2130_v9  ;;  %v2137_v16 = vrot.slane %v2136_v1, 2  ;;  %v1724_v10 = vcombine.high %v1716_v3, %v1716_v3  ;;  %v2211_v11 = vsel %vm1790_vm1, %v1716_v3, -inf }
 0x1cd   : > { %v2172_v18 = vrot.slane %v2171_v50, 2  ;;  %v2151_v56 = vrot.slane %v2150_v33, 2  ;;  %v2212_v61 = vrot.slane %v2211_v11, 4  ;;  %v2160_v24 = vrot.slane %v2159_v0, 1 }
 0x1ce   : > { %v2138_v21 = vmax.f32 %v2136_v1, %v2137_v16  ;;  %v2218_v7 = vsel %vm1790_vm1, %v1724_v10, -inf  ;;  %v2225_v43 = vsel %vm1790_vm1, %v1723_v22, -inf  ;;  %v2132_v13 = vrot.slane %v2131_v42, 1 }
 0x1cf   : > { %v2145_v12 = vmax.f32 %v2143_v29, %v2144_v38  ;;  %v2213_v23 = vmax.f32 %v2211_v11, %v2212_v61  ;;  %v2219_v53 = vrot.slane %v2218_v7, 4  ;;  %v5494_v4 = vsel %vm2407_vm9, %v2084_v14, %v2077_v58 }
 0x1d0   : > { %v5496_v55 = vmax.f32 %v2150_v33, %v2151_v56  ;;  %v1725_v34 = vcombine.high %v1723_v22, %v1723_v22  ;;  %v2226_v15 = vrot.slane %v2225_v43, 4  ;;  %v2177_v9 = vrot.slane %v5485_v28, 4 }
 0x1d1   : > { %v2139_v3 = vrot.slane %v2138_v21, 1  ;;  %v2214_v60 = vrot.slane %v2213_v23, 2  ;;  %v2220_v1 = vmax.f32 %v2218_v7, %v2219_v53  ;;  %v5499_v16 = vmax.f32 %v2159_v0, %v2160_v24 }
 0x1d2   : > { %v2167_v10 = vrot.slane %v5489_v44, 1  ;;  %v5502_v41 = vmax.f32 %v2171_v50, %v2172_v18  ;;  %v1420_v29 = vadd.f32 %v4596_v57, %v5241_v59  ;;  %v2133_v38 = vmax.f32 %v2131_v42, %v2132_v13 }
 0x1d3   : > { %v2146_v58 = vrot.slane %v2145_v12, 1  ;;  %v2215_v14 = vmax.f32 %v2213_v23, %v2214_v60  ;;  %v2227_v33 = vmax.f32 %v2225_v43, %v2226_v15  ;;  %v2153_v22 = vrot.slane %v5496_v55, 1 }
 0x1d4   : > { %v5507_v11 = vsel %vm1790_vm1, %v1725_v34, -inf  ;;  %v1436_v56 = vmax.f32 %v1420_v29, 0.0  ;;  %v1843_v61 = vrot.slane %v5275_v19, 2  ;;  %v2140_v0 = vmax.f32 %v2138_v21, %v2139_v3 }
 0x1d5   : > { %v2221_v24 = vrot.slane %v2220_v1, 2  ;;  %v2410_v50 = vsel %vm2409_vm10, %v5308_v26, %v5319_v35  ;;  %v6214_v60 = vrot.slane %v5281_v32, 1  ;;  %v2216_v7 = vrot.slane %v2215_v14, 1 }
 0x1d6   : > { %v1692_v59 = vcombine.high %v1436_v56, %v1436_v56  ;;  %v1699_v57 = vrot.slane %v1436_v56, %v5244_v62  ;;  %v1844_v18 = vmax.f32 %v5275_v19, %v1843_v61  ;;  %v2228_v43 = vrot.slane %v2227_v33, 2 }
 0x1d7   : > { %v1839_v42 = vmax.f32 %v5281_v32, %v6214_v60  ;;  %v2412_v21 = vsel %vm2411_vm11, %v5310_v40, %v2410_v50 }
 0x1d8   : > { %v1706_v13 = vrot.slane %v1692_v59, %v5244_v62  ;;  %v1707_v23 = vcombine.high %v1699_v57, %v1699_v57  ;;  %v2183_v26 = vsel %vm1790_vm1, %v1699_v57, -inf  ;;  %v1845_v35 = vrot.slane %v1844_v18, 1 }
 0x1d9   : > { %v2184_v53 = vrot.slane %v2183_v26, 4  ;;  %v2414_v34 = vsel %vm2413_vm12, %v5290_v49, %v2412_v21 }
 0x1da   : > { %v1708_v32 = vcombine.high %v1706_v13, %v1706_v13  ;;  %v2190_v19 = vsel %vm1790_vm1, %v1707_v23, -inf  ;;  %v2197_v15 = vsel %vm1790_vm1, %v1706_v13, -inf  ;;  %v1846_v3 = vmax.f32 %v1844_v18, %v1845_v35 }
 0x1db   : > { %v2185_v40 = vmax.f32 %v2183_v26, %v2184_v53  ;;  %v2191_v29 = vrot.slane %v2190_v19, 4  ;;  %v2198_v56 = vrot.slane %v2197_v15, 4  ;;  %v2416_v61 = vsel %vm2415_vm13, %v5297_v8, %v2414_v34 }
 0x1dc   : > { %v2204_v50 = vsel %vm1790_vm1, %v1708_v32, -inf  ;;  %v2418_v59 = vsel %vm2417_vm14, %v1839_v42, %v2416_v61  ;;  %v5530_v23 = vmax.f32 %v2145_v12, %v2146_v58  ;;  %v2233_v18 = vrot.slane %v5507_v11, 4 }
 0x1dd   : > { %v2186_v49 = vrot.slane %v2185_v40, 2  ;;  %v2192_v57 = vmax.f32 %v2190_v19, %v2191_v29  ;;  %v2199_v60 = vmax.f32 %v2197_v15, %v2198_v56  ;;  %v2205_v21 = vrot.slane %v2204_v50, 4  ;;  %v6218_v56 = vld [vmem:[#allocation17_spill] sm:$0xff] }
 0x1de   : > { %v5534_v13 = vsel %vm2419_vm15, %v1846_v3, %v2418_v59  ;;  %v2423_v8 = vsel %vm2411_vm11, %v5351_v54, %v5354_v47  ;;  %v5539_v26 = vmax.f32 %v2220_v1, %v2221_v24  ;;  %v5544_v12 = vmax.f32 %v5496_v55, %v2153_v22  ;;  %v6220_v59 = vld [vmem:[#allocation18_spill] sm:$0xff] }
 0x1df   : > { %v2193_v42 = vrot.slane %v2192_v57, 2  ;;  %v2200_v35 = vrot.slane %v2199_v60, 2  ;;  %v2206_v53 = vmax.f32 %v2204_v50, %v2205_v21  ;;  %4314 = vmatprep.mubr.msk.f32.mxu0 %vm2575_vm0, %v5534_v13  ;;  %v5547_v58 = vsel %vm2407_vm9, %v2140_v0, %v2133_v38 }
 0x1e0   : > { %v2424_v34 = vsel %vm2413_vm12, %v5323_v20, %v2423_v8  ;;  %v1955_v32 = vrot.slane %v5361_v31, 2  ;;  %v5552_v54 = vmax.f32 %v2215_v14, %v2216_v7  ;;  %v5554_v47 = vmax.f32 %v2227_v33, %v2228_v43  ;;  %v6216_v7 = vld [vmem:[#allocation16_spill] sm:$0xff] }
 0x1e1   : > { %v2187_v1 = vmax.f32 %v2185_v40, %v2186_v49  ;;  %v2207_v24 = vrot.slane %v2206_v53, 2  ;;  %v2194_v19 = vmax.f32 %v2192_v57, %v2193_v42  ;;  %v2425_v15 = vsel %vm2415_vm13, %v5328_v45, %v2424_v34  ;;  %v6222_v42 = vld [vmem:[#allocation19_spill] sm:$0xff] }
 0x1e2   : > { %v1956_v55 = vmax.f32 %v5361_v31, %v1955_v32  ;;  %v2429_v38 = vsel %vm2409_vm10, %v5367_v17, %v5375_v37  ;;  %v2223_v20 = vrot.slane %v5539_v26, 1  ;;  %v2201_v22 = vmax.f32 %v2199_v60, %v2200_v35  ;;  %v6217_v31 = vld [vmem:[#allocation20_spill] sm:$0xff] }
 0x1e3   : > { %v2208_v0 = vmax.f32 %v2206_v53, %v2207_v24  ;;  %v6215_v14 = vrot.slane %v5315_v27, 1  ;;  %v2426_v43 = vsel %vm2417_vm14, %v6216_v7, %v2425_v15  ;;  %v2430_v45 = vsel %vm2411_vm11, %v5393_v25, %v2429_v38  ;;  %v6223_v38 = vld [vmem:[#allocation21_spill] sm:$0xff] }
 0x1e4   : > { %v1957_v3 = vrot.slane %v1956_v55, 1  ;;  %v2011_v40 = vrot.slane %v6217_v31, 2  ;;  %v2188_v29 = vrot.slane %v2187_v1, 1  ;;  %v2478_v17 = vrot.slane %v5534_v13, 7 }
 0x1e5   : > { %v1902_v33 = vmax.f32 %v5315_v27, %v6215_v14  ;;  %v6219_v61 = vrot.slane %v6218_v56, 1  ;;  %v2195_v27 = vrot.slane %v2194_v19, 1  ;;  %v2431_v49 = vsel %vm2413_vm12, %v6220_v59, %v2430_v45  ;;  %v6224_v14 = vld [vmem:[#allocation23_spill] sm:$0xff] }
 0x1e6   : > { %v6221_v25 = vrot.slane %v5381_v30, 1  ;;  %v2012_v60 = vmax.f32 %v6217_v31, %v2011_v40  ;;  %v2202_v21 = vrot.slane %v2201_v22, 1  ;;  %v1958_v8 = vmax.f32 %v1956_v55, %v1957_v3  ;;  %v6225_v3 = vld [vmem:[#allocation22_spill] sm:$0xff]  ;;  %v6226_v31 = vld [vmem:[#allocation24_spill] sm:$0xff] }
 0x1e7   : > { %v5573_v37 = vsel %vm2419_vm15, %v1902_v33, %v2426_v43  ;;  %v1951_v50 = vmax.f32 %v6218_v56, %v6219_v61  ;;  %v2432_v35 = vsel %vm2415_vm13, %v6222_v42, %v2431_v49  ;;  %v2436_v53 = vsel %vm2409_vm10, %v5402_v5, %v5424_v51 }
 0x1e8   : > { %4315 = vmatmul.mubr.msk.f32.vlgmr.msra.gmra.mrb[16].mxu0 %vm2575_vm0, %v5573_v37  ;;  %v2007_v57 = vmax.f32 %v5381_v30, %v6221_v25  ;;  %v2209_v34 = vrot.slane %v2208_v0, 1  ;;  %v2013_v24 = vrot.slane %v2012_v60, 1  ;;  %v2437_v15 = vsel %vm2411_vm11, %v5419_v39, %v2436_v53  ;;  %v6229_v25 = vld [vmem:[#allocation26_spill] sm:$0xff] }
 0x1e9   : > { %v2433_v32 = vsel %vm2417_vm14, %v1951_v50, %v2432_v35  ;;  %v2438_v55 = vsel %vm2413_vm12, %v6223_v38, %v2437_v15  ;;  %v2067_v33 = vrot.slane %v6224_v14, 2  ;;  %v2443_v7 = vsel %vm2409_vm10, %v5445_v52, %v5456_v46 }
 0x1ea   : > { %v5595_v30 = vsel %vm2419_vm15, %v1958_v8, %v2433_v32  ;;  %v2189_v5 = vmax.f32 %v2187_v1, %v2188_v29  ;;  %v2196_v51 = vmax.f32 %v2194_v19, %v2195_v27  ;;  %v2014_v43 = vmax.f32 %v2012_v60, %v2013_v24  ;;  %v6228_v1 = vld [vmem:[#allocation25_spill] sm:$0xff]  ;;  %v6232_v24 = vld [vmem:[#allocation28_spill] sm:$0xff] }
 0x1eb   : > { %4317 = vmatprep.mubr.msk.f32.mxu0 %vm2575_vm0, %v5595_v30  ;;  %v2439_v39 = vsel %vm2415_vm13, %v6225_v3, %v2438_v55  ;;  %v6227_v40 = vrot.slane %v6226_v31, 1  ;;  %v2068_v61 = vmax.f32 %v6224_v14, %v2067_v33  ;;  %v2444_v52 = vsel %vm2411_vm11, %v5453_v2, %v2443_v7  ;;  %v2567_v60 = vld [vmem:[#allocation4 + $0x8] sm:$0xff]  ;;  %v2569_v3 = vld [vmem:[#allocation4 + $0x18] sm:$0xff] }
 0x1ec   : > { %v2440_v45 = vsel %vm2417_vm14, %v2007_v57, %v2439_v39  ;;  %v2445_v19 = vsel %vm2413_vm12, %v6228_v1, %v2444_v52  ;;  %v2123_v29 = vrot.slane %v5464_v6, 2  ;;  %v2450_v50 = vsel %vm2409_vm10, %v5476_v36, %v5494_v4  ;;  %v2566_v57 = vld [vmem:[#allocation4] sm:$0xff] }
 0x1ed   : > { %v2063_v56 = vmax.f32 %v6226_v31, %v6227_v40  ;;  %v5615_v46 = vsel %vm2419_vm15, %v2014_v43, %v2440_v45  ;;  %v2203_v27 = vmax.f32 %v2201_v22, %v2202_v21  ;;  %v2210_v59 = vmax.f32 %v2208_v0, %v2209_v34  ;;  %v6231_v22 = vld [vmem:[#allocation27_spill] sm:$0xff]  ;;  %v2568_v43 = vld [vmem:[#allocation4 + $0x10] sm:$0xff]  ;;  %v2827_v40 = vld [vmem:[#allocation4 + $0x40] sm:$0xff] }
 0x1ee   : > { %4318 = vmatmul.mubr.msk.f32.gmra.mrb[18].mxu0 %vm2575_vm0, %v5615_v46  ;;  %v2069_v49 = vrot.slane %v2068_v61, 1  ;;  %v2446_v2 = vsel %vm2415_vm13, %v6229_v25, %v2445_v19  ;;  %v6230_v42 = vrot.slane %v5451_v63, 1  ;;  %v2124_v53 = vmax.f32 %v5464_v6, %v2123_v29  ;;  %v6233_v25 = vld [vmem:[#allocation8_spill] sm:$0xff] }
 0x1ef   : > { %v2447_v8 = vsel %vm2417_vm14, %v2063_v56, %v2446_v2  ;;  %v2451_v36 = vsel %vm2411_vm11, %v5481_v48, %v2450_v50  ;;  %v2174_v21 = vrot.slane %v5502_v41, 1  ;;  %v2178_v34 = vmax.f32 %v5485_v28, %v2177_v9  ;;  %v2828_v56 = vld [vmem:[#allocation4 + $0x48] sm:$0xff] }
 0x1f0   : > { %v2119_v35 = vmax.f32 %v5451_v63, %v6230_v42  ;;  %v2070_v4 = vmax.f32 %v2068_v61, %v2069_v49  ;;  %v2452_v0 = vsel %vm2413_vm12, %v6231_v22, %v2451_v36  ;;  %v2125_v32 = vrot.slane %v2124_v53, 1  ;;  %v6235_v22 = vld [vmem:[#allocation9_spill] sm:$0xff] }
 0x1f1   : > { %v2453_v15 = vsel %vm2415_vm13, %v6232_v24, %v2452_v0  ;;  %v2457_v63 = vsel %vm2409_vm10, %v5530_v23, %v5547_v58  ;;  %v4503_v6 = vpack.c.bf16 %v2567_v60, %v2566_v57  ;;  %v2463_v48 = vsel %vm2407_vm9, %v2196_v51, %v2189_v5 }
 0x1f2   : > { %v5647_v38 = vsel %vm2419_vm15, %v2070_v4, %v2447_v8  ;;  %v2454_v55 = vsel %vm2417_vm14, %v2119_v35, %v2453_v15  ;;  %v2179_v14 = vrot.slane %v2178_v34, 2  ;;  %v2479_v33 = vrot.slane %v5573_v37, 7  ;;  %v6234_v35 = vld [vmem:[#allocation12_spill] sm:$0xff] }
 0x1f3   : > { %4320 = vmatprep.mubr.msk.f32.mxu0 %vm2575_vm0, %v5647_v38  ;;  %v2126_v28 = vmax.f32 %v2124_v53, %v2125_v32  ;;  %v2168_v9 = vmax.f32 %v5489_v44, %v2167_v10  ;;  %v2458_v23 = vsel %vm2411_vm11, %v5544_v12, %v2457_v63  ;;  %4504 = vmatprep.subr.bf16.mxu1 %v4503_v6  ;;  %v2230_v51 = vrot.slane %v5554_v47, 1 }
 0x1f4   : > { %v2175_v58 = vmax.f32 %v5502_v41, %v2174_v21  ;;  %v2180_v7 = vmax.f32 %v2178_v34, %v2179_v14  ;;  %v2459_v5 = vsel %vm2413_vm12, %v5499_v16, %v2458_v23  ;;  %4506 = vmatpush3.bf16.msra.mxu1 %v4503_v6  ;;  %v2234_v10 = vmax.f32 %v5507_v11, %v2233_v18  ;;  %v2830_v14 = vld [vmem:[#allocation4 + $0x58] sm:$0xff] }
 0x1f5   : > { %v5663_v39 = vsel %vm2419_vm15, %v2126_v28, %v2454_v55  ;;  %v2460_v44 = vsel %vm2415_vm13, %v2168_v9, %v2459_v5  ;;  %v2464_v41 = vsel %vm2409_vm10, %v2203_v27, %v2463_v48  ;;  %v2480_v12 = vrot.slane %v5595_v30, 7  ;;  %v2829_v55 = vld [vmem:[#allocation4 + $0x50] sm:$0xff] }
 0x1f6   : > { %v2481_v16 = vrot.slane %v5615_v46, 7  ;;  %4321 = vmatmul.mubr.msk.f32.gmra.mrb[20].mxu0 %vm2575_vm0, %v5663_v39  ;;  %v2181_v45 = vrot.slane %v2180_v7, 1  ;;  %v2461_v31 = vsel %vm2417_vm14, %v2175_v58, %v2460_v44  ;;  %v2224_v61 = vmax.f32 %v5539_v26, %v2223_v20  ;;  %v4069_v48 = vld [vmem:[%s6148_s5 + $0xe0] sm:$0xff] }
 0x1f7   : > { %v2235_v52 = vrot.slane %v2234_v10, 2  ;;  %v2465_v11 = vsel %vm2411_vm11, %v2210_v59, %v2464_v41  ;;  %v4507_v18 = vpack.c.bf16 %v2569_v3, %v2568_v43  ;;  %v2482_v1 = vrot.slane %v5647_v38, 7 }
 0x1f8   : > { %v2182_v19 = vmax.f32 %v2180_v7, %v2181_v45  ;;  %v2231_v29 = vmax.f32 %v5554_v47, %v2230_v51  ;;  %v2466_v50 = vsel %vm2413_vm12, %v5552_v54, %v2465_v11  ;;  %v2492_v26 = vsel %vm623_vm4, %v2478_v17, %v2479_v33  ;;  %v6245_v45 = vld [vmem:[#allocation11_spill] sm:$0xff] }
 0x1f9   : > { %v2236_v27 = vmax.f32 %v2234_v10, %v2235_v52  ;;  %v2467_v49 = vsel %vm2415_vm13, %v2224_v61, %v2466_v50  ;;  %4508 = vmatprep.subr.bf16.mxu1 %v4507_v18  ;;  %v4511_v20 = vpack.c.bf16 %v2828_v56, %v2827_v40  ;;  %v2483_v59 = vrot.slane %v5663_v39, 7 }
 0x1fa   : > { %v2462_v2 = vsel %vm2419_vm15, %v2182_v19, %v2461_v31  ;;  %v2468_v57 = vsel %vm2417_vm14, %v2231_v29, %v2467_v49  ;;  %4510 = vmatpush3.bf16.msra.mxu1 %v4507_v18  ;;  %v2491_v47 = vsel %vm623_vm4, %v2479_v33, %v2480_v12  ;;  %v2490_v60 = vsel %vm623_vm4, %v2480_v12, %v2481_v16  ;;  %v4052_v33 = vld [vmem:[%s6148_s5 + $0x70] sm:$0xff] }
 0x1fb   : > { %4323 = vmatprep.mubr.msk.f32.mxu0 %vm2575_vm0, %v2462_v2  ;;  %v2237_v54 = vrot.slane %v2236_v27, 1  ;;  %4512 = vmatprep.subr.bf16.mxu1 %v4511_v20  ;;  %v2484_v8 = vrot.slane %v2462_v2, 7  ;;  %v2250_v53 = vand.u32 7, %v6234_v35  ;;  %v2489_v36 = vsel %vm623_vm4, %v2481_v16, %v2482_v1 }
 0x1fc   : > { %v2243_v4 = vand.u32 7, %v6233_v25  ;;  %v2257_v0 = vand.u32 7, %v6235_v22  ;;  %v2488_v21 = vsel %vm623_vm4, %v2482_v1, %v2483_v59  ;;  %v2526_v34 = vrot.slane %v5534_v13, 1  ;;  %v6246_v1 = vld [vmem:[#allocation15_spill] sm:$0xff]  ;;  %v4048_v22 = vld [vmem:[%s6148_s5 + $0x50] sm:$0xff] }
 0x1fd   : > { %v2238_v42 = vmax.f32 %v2236_v27, %v2237_v54  ;;  %v2528_v32 = vrot.slane %v5595_v30, 1  ;;  %v2529_v15 = vrot.slane %v5615_v46, 1  ;;  %v2530_v63 = vrot.slane %v5647_v38, 1  ;;  %v6240_v30 = vld [vmem:[#allocation13_spill] sm:$0xff]  ;;  %v6241_v46 = vld [vmem:[#allocation10_spill] sm:$0xff] }
 0x1fe   : > { %vm5709_vm2 = vcmp.eq.s32.totalorder %v2243_v4, 0  ;;  %vm5715_vm3 = vcmp.eq.s32.totalorder %v2250_v53, 0  ;;  %v2264_v28 = vand.u32 7, %v6240_v30  ;;  %v2271_v9 = vand.u32 7, %v6241_v46  ;;  %v4053_v30 = vld [vmem:[%s6148_s5 + $0x78] sm:$0xff] }
 0x1ff   : > { %v2469_v24 = vsel %vm2419_vm15, %v2238_v42, %v2468_v57  ;;  %v2487_v38 = vsel %vm623_vm4, %v2483_v59, %v2484_v8  ;;  %vm5729_vm5 = vcmp.eq.s32.totalorder %v2257_v0, 0  ;;  %v2527_v5 = vrot.slane %v5573_v37, 1 }
 0x200   : > { %v2485_v6 = vrot.slane %v2469_v24, 7  ;;  %4324 = vmatmul.mubr.msk.f32.gmra.mrb[22].mxu0 %vm2575_vm0, %v2469_v24  ;;  %v2531_v51 = vrot.slane %v5663_v39, 1  ;;  %v2532_v43 = vrot.slane %v2462_v2, 1  ;;  %v4515_v3 = vpack.c.bf16 %v2830_v14, %v2829_v55  ;;  %v6244_v39 = vld [vmem:[#allocation14_spill] sm:$0xff]  ;;  %v4070_v55 = vld [vmem:[%s6148_s5 + $0xe8] sm:$0xff] }
 0x201   : > { %v2533_v44 = vrot.slane %v2469_v24, 1  ;;  %v2540_v10 = vsel %vm720_vm7, %v2526_v34, %v2527_v5  ;;  %v2539_v41 = vsel %vm720_vm7, %v2527_v5, %v2528_v32  ;;  %v2512_v37 = vsel %vm5729_vm5, 0.0, %v2491_v47 }
 0x202   : > { %v2493_v23 = vsel %vm623_vm4, %v2485_v6, %v2478_v17  ;;  %v2486_v7 = vsel %vm623_vm4, %v2484_v8, %v2485_v6  ;;  %v2511_v17 = vsel %vm5715_vm3, 0.0, %v2492_v26  ;;  %vm2338_vm4 = vcmp.eq.s32.totalorder %v2264_v28, 0  ;;  %v4047_v8 = vld [vmem:[%s6148_s5 + $0x48] sm:$0xff] }
 0x203   : > { %v2510_v13 = vsel %vm5709_vm2, 0.0, %v2493_v23  ;;  %v2278_v12 = vand.u32 7, %v6244_v39  ;;  %v2538_v16 = vsel %vm720_vm7, %v2528_v32, %v2529_v15  ;;  %vm2339_vm6 = vcmp.eq.s32.totalorder %v2271_v9, 0  ;;  %v4068_v32 = vld [vmem:[%s6148_s5 + $0xd8] sm:$0xff] }
 0x204   : > { %4334 = vmatprep.mubr.msk.f32.mxu1 %vm2575_vm0, %v2510_v13  ;;  %v2285_v31 = vand.u32 7, %v6245_v45  ;;  %v2537_v40 = vsel %vm720_vm7, %v2529_v15, %v2530_v63  ;;  %v2536_v56 = vsel %vm720_vm7, %v2530_v63, %v2531_v51  ;;  %v2535_v61 = vsel %vm720_vm7, %v2531_v51, %v2532_v43  ;;  %v4050_v15 = vld [vmem:[%s6148_s5 + $0x60] sm:$0xff]  ;;  %v4051_v63 = vld [vmem:[%s6148_s5 + $0x68] sm:$0xff] }
 0x205   : > { %4335 = vmatmul.mubr.msk.f32.vlgmr.msra.gmra.mrb[4].mxu1 %vm2575_vm0, %v2511_v17  ;;  %v2513_v52 = vsel %vm2338_vm4, 0.0, %v2490_v60  ;;  %v2534_v11 = vsel %vm720_vm7, %v2532_v43, %v2533_v44  ;;  %v2514_v18 = vsel %vm2339_vm6, 0.0, %v2489_v36  ;;  %vm2340_vm8 = vcmp.eq.s32.totalorder %v2278_v12, 0  ;;  %v4046_v60 = vld [vmem:[%s6148_s5 + $0x40] sm:$0xff]  ;;  %v4066_v36 = vld [vmem:[%s6148_s5 + $0xc8] sm:$0xff] }
 0x206   : > { %4337 = vmatprep.mubr.msk.f32.mxu1 %vm2575_vm0, %v2512_v37  ;;  %4514 = vmatpush3.bf16.msra.mxu1 %v4511_v20  ;;  %v2292_v19 = vand.u32 7, %v6246_v1  ;;  %v2541_v29 = vsel %vm720_vm7, %v2533_v44, %v2526_v34  ;;  %vm2341_vm1 = vcmp.eq.s32.totalorder %v2285_v31, 0  ;;  %v2515_v50 = vsel %vm2340_vm8, 0.0, %v2488_v21  ;;  %v4067_v34 = vld [vmem:[%s6148_s5 + $0xd0] sm:$0xff] }
 0x207   : > { %4516 = vmatprep.subr.bf16.mxu1 %v4515_v3  ;;  %v2516_v27 = vsel %vm2341_vm1, 0.0, %v2487_v38  ;;  %vm2518_vm3 = vcmp.eq.s32.totalorder %v2243_v4, 7  ;;  %vm2519_vm5 = vcmp.eq.s32.totalorder %v2250_v53, 7  ;;  %vm2520_vm7 = vcmp.eq.s32.totalorder %v2257_v0, 7  ;;  %v4065_v53 = vld [vmem:[%s6148_s5 + $0xc0] sm:$0xff]  ;;  %v4049_v0 = vld [vmem:[%s6148_s5 + $0x58] sm:$0xff] }
 0x208   : > { %vm2342_vm2 = vcmp.eq.s32.totalorder %v2292_v19, 0  ;;  %v2558_v26 = vsel %vm2518_vm3, 0.0, %v2540_v10  ;;  %v2559_v25 = vsel %vm2519_vm5, 0.0, %v2539_v41  ;;  %v2560_v20 = vsel %vm2520_vm7, 0.0, %v2538_v16  ;;  %v4072_v38 = vld [vmem:[%s6148_s5 + $0xf8] sm:$0xff] }
 0x209   : > { %4338 = vmatmul.mubr.msk.f32.gmra.mrb[6].mxu1 %vm2575_vm0, %v2513_v52  ;;  %v2517_v49 = vsel %vm2342_vm2, 0.0, %v2486_v7  ;;  %vm2521_vm4 = vcmp.eq.s32.totalorder %v2264_v28, 7  ;;  %vm2522_vm6 = vcmp.eq.s32.totalorder %v2271_v9, 7  ;;  %vm2523_vm8 = vcmp.eq.s32.totalorder %v2278_v12, 7  ;;  %v4071_v9 = vld [vmem:[%s6148_s5 + $0xf0] sm:$0xff] }
 0x20a   : > { %4340 = vmatprep.mubr.msk.f32.mxu1 %vm2575_vm0, %v2514_v18  ;;  %4518 = vmatpush3.bf16.msra.mxu1 %v4515_v3  ;;  %v2561_v59 = vsel %vm2521_vm4, 0.0, %v2537_v40  ;;  %v2562_v2 = vsel %vm2522_vm6, 0.0, %v2536_v56  ;;  %vm2524_vm1 = vcmp.eq.s32.totalorder %v2285_v31, 7  ;;  %v2563_v57 = vsel %vm2523_vm8, 0.0, %v2535_v61  ;;  %v5854_v10 = vld [vmem:[%s6147_s4] ss:$0 sm:$0xff] }
 0x20b   : > { %v2564_v54 = vsel %vm2524_vm1, 0.0, %v2534_v11  ;;  %vm2525_vm2 = vcmp.eq.s32.totalorder %v2292_v19, 7  ;;  %v4520_v42 = vpack.c.bf16 %v4047_v8, %v4046_v60  ;;  %v4755_v35 = vmov 0.0|0.0  }
 0x20c   : > { %v2565_v47 = vsel %vm2525_vm2, 0.0, %v2541_v29  ;;  %4519 = vmatprep.subr.bf16.mxu1 %v4755_v35  ;;  %4555 = vmatprep.subr.bf16.mxu0 %v4755_v35  ;;  %v4556_v4 = vpack.c.bf16 %v4066_v36, %v4065_v53  ;;  %v4523_v21 = vpack.c.bf16 %v4049_v0, %v4048_v22  ;;  %v4559_v24 = vpack.c.bf16 %v4068_v32, %v4067_v34 }
 0x20d   : > { %4341 = vmatmul.mubr.msk.f32.gmra.mrb[8].mxu1 %vm2575_vm0, %v2515_v50  ;;  %v4526_v6 = vpack.c.bf16 %v4051_v63, %v4050_v15  ;;  %v4562_v14 = vpack.c.bf16 %v4070_v55, %v4069_v48  ;;  %v4529_v28 = vpack.c.bf16 %v4053_v30, %v4052_v33  ;;  %v4565_v58 = vpack.c.bf16 %v4072_v38, %v4071_v9 }
 0x20e   : > { %4343 = vmatprep.mubr.msk.f32.mxu1 %vm2575_vm0, %v2516_v27  ;;  %4557 = vmatpush3.bf16.msra.mxu0 %v4556_v4  ;;  %v4757_v7 = vmov 0.0   ;;  %vm3167_vm3 = vcmask 517120  }
 0x20f   : > { %4558 = vmatprep.subr.bf16.mxu0 %v4755_v35 }
 0x211   : > { %4344 = vmatmul.mubr.msk.f32.gmra.mrb[10].mxu1 %vm2575_vm0, %v2517_v49 }
 0x212   : > { %4354 = vmatprep.mubr.msk.f32.mxu1 %vm2575_vm0, %v2558_v26  ;;  %4560 = vmatpush3.bf16.msra.mxu0 %v4559_v24 }
 0x213   : > { %4561 = vmatprep.subr.bf16.mxu0 %v4755_v35 }
 0x215   : > { %4355 = vmatmul.mubr.msk.f32.vlgmr.msra.gmra.mrb[4].mxu1 %vm2575_vm0, %v2559_v25 }
 0x216   : > { %4357 = vmatprep.mubr.msk.f32.mxu1 %vm2575_vm0, %v2560_v20  ;;  %4521 = vmatpush3.bf16.msra.mxu1 %v4520_v42 }
 0x217   : > { %4522 = vmatprep.subr.bf16.mxu1 %v4755_v35  ;;  %4563 = vmatpush3.bf16.msra.mxu0 %v4562_v14 }
 0x218   : > { %4564 = vmatprep.subr.bf16.mxu0 %v4755_v35 }
 0x219   : > { %4358 = vmatmul.mubr.msk.f32.gmra.mrb[6].mxu1 %vm2575_vm0, %v2561_v59 }
 0x21a   : > { %4360 = vmatprep.mubr.msk.f32.mxu1 %vm2575_vm0, %v2562_v2  ;;  %4524 = vmatpush3.bf16.msra.mxu1 %v4523_v21 }
 0x21b   : > { %4525 = vmatprep.subr.bf16.mxu1 %v4755_v35  ;;  %4566 = vmatpush3.bf16.msra.mxu0 %v4565_v58 }
 0x21d   : > { %4361 = vmatmul.mubr.msk.f32.gmra.mrb[8].mxu1 %vm2575_vm0, %v2563_v57 }
 0x21e   : > { %4363 = vmatprep.mubr.msk.f32.mxu1 %vm2575_vm0, %v2564_v54  ;;  %4527 = vmatpush3.bf16.msra.mxu1 %v4526_v6 }
 0x21f   : > { %4528 = vmatprep.subr.bf16.mxu1 %v4755_v35 }
 0x221   : > { %4364 = vmatmul.mubr.msk.f32.gmra.mrb[10].mxu1 %vm2575_vm0, %v2565_v47  ;;  %vm4756_vm0 = vmmov 0  }
 0x222   : > { %4530 = vmatpush3.bf16.msra.mxu1 %v4529_v28  ;;  %4382 = vmatprep.mubr.msk.f32.mxu1 %vm4756_vm0, %v4757_v7 }
 0x223   : > { %4531 = vmatprep.subr.bf16.mxu1 %v4755_v35  ;;  %4439 = vmatprep.mubr.msk.f32.mxu0 %vm4756_vm0, %v4757_v7 }
 0x2bb   : > { %v4316_v46 = vpop.f32.mrb[16].mxu0 }
 0x2bc   : > { %v2658_v23 = vpop.f32.mrb[17].mxu0 }
 0x2c1   : > { %v4319_v5 = vpop.f32.mrb[18].mxu0 }
 0x2c2   : > { %v2668_v51 = vpop.f32.mrb[19].mxu0 }
 0x2c9   : > { %v5843_v43 = vpop.f32.mrb[20].mxu0 }
 0x2ca   : > { %v5845_v13 = vpop.f32.mrb[21].mxu0 }
 0x2d3   : > { %v5847_v3 = vpop.f32.mrb[22].mxu0 }
 0x2d4   : > { %v5849_v44 = vpop.f32.mrb[23].mxu0 }
 0x2e8   : > { %v4356_v17 = vpop.f32.mrb[4].mxu1 }
 0x2e9   : > { %v4597_v41 = vadd.f32 %v4356_v17, %v4316_v46  ;;  %v2921_v37 = vpop.f32.mrb[5].mxu1 }
 0x2ea   : > { %v4598_v39 = vadd.f32 %v2921_v37, %v2658_v23 }
 0x2eb   : > { %v2976_v12 = vadd.f32 %v4597_v41, %v5854_v10 }
 0x2ec   : > { %v2975_v16 = vadd.f32 %v4598_v39, %v5854_v10  ;;  %v4359_v45 = vpop.f32.mrb[6].mxu1 }
 0x2ed   : > { %v2984_v31 = vmax.f32 %v2976_v12, 0.0  ;;  %v4599_v40 = vadd.f32 %v4359_v45, %v4319_v5  ;;  %v2931_v56 = vpop.f32.mrb[7].mxu1 }
 0x2ee   : > { %v2983_v61 = vmax.f32 %v2975_v16, 0.0  ;;  %v4600_v52 = vadd.f32 %v2931_v56, %v2668_v51 }
 0x2ef   : > { %v3016_v11 = vcombine.high %v2984_v31, %v2984_v31  ;;  %v3023_v18 = vrot.slane %v2984_v31, %v5244_v62  ;;  %v2978_v1 = vadd.f32 %v4599_v40, %v5854_v10 }
 0x2f0   : > { %v2999_v19 = vcombine.high %v2983_v61, %v2983_v61  ;;  %v3006_v29 = vrot.slane %v2983_v61, %v5244_v62  ;;  %v5862_v50 = vadd.f32 %v4600_v52, %v5854_v10  ;;  %v5864_v27 = vpop.f32.mrb[8].mxu1 }
 0x2f1   : > { %v3030_v49 = vrot.slane %v3016_v11, %v5244_v62  ;;  %v3031_v26 = vcombine.high %v3023_v18, %v3023_v18  ;;  %v3196_v25 = vsel %vm3167_vm3, %v3023_v18, -inf  ;;  %v5868_v20 = vmax.f32 %v2978_v1, 0.0  ;;  %v5870_v59 = vpop.f32.mrb[9].mxu1 }
 0x2f2   : > { %v3197_v2 = vrot.slane %v3196_v25, 4  ;;  %v3013_v57 = vrot.slane %v2999_v19, %v5244_v62  ;;  %v3014_v54 = vcombine.high %v3006_v29, %v3006_v29  ;;  %v3168_v47 = vsel %vm3167_vm3, %v3006_v29, -inf }
 0x2f3   : > { %v3032_v60 = vcombine.high %v3030_v49, %v3030_v49  ;;  %v3203_v8 = vsel %vm3167_vm3, %v3031_v26, -inf  ;;  %v3210_v42 = vsel %vm3167_vm3, %v3030_v49, -inf  ;;  %v3169_v53 = vrot.slane %v3168_v47, 4 }
 0x2f4   : > { %v3198_v36 = vmax.f32 %v3196_v25, %v3197_v2  ;;  %v3204_v4 = vrot.slane %v3203_v8, 4  ;;  %v3211_v22 = vrot.slane %v3210_v42, 4  ;;  %v3015_v0 = vcombine.high %v3013_v57, %v3013_v57  ;;  %v5876_v21 = vpop.f32.mrb[10].mxu1 }
 0x2f5   : > { %v3217_v34 = vsel %vm3167_vm3, %v3032_v60, -inf  ;;  %v3170_v32 = vmax.f32 %v3168_v47, %v3169_v53  ;;  %v3175_v24 = vsel %vm3167_vm3, %v3014_v54, -inf  ;;  %v3182_v15 = vsel %vm3167_vm3, %v3013_v57, -inf  ;;  %v5881_v63 = vpop.f32.mrb[11].mxu1 }
 0x2f6   : > { %v3199_v6 = vrot.slane %v3198_v36, 2  ;;  %v3205_v48 = vmax.f32 %v3203_v8, %v3204_v4  ;;  %v3212_v55 = vmax.f32 %v3210_v42, %v3211_v22  ;;  %v3218_v14 = vrot.slane %v3217_v34, 4 }
 0x2f7   : > { %v3171_v33 = vrot.slane %v3170_v32, 2  ;;  %v3176_v30 = vrot.slane %v3175_v24, 4  ;;  %v3183_v28 = vrot.slane %v3182_v15, 4  ;;  %v3189_v46 = vsel %vm3167_vm3, %v3015_v0, -inf }
 0x2f8   : > { %v3200_v9 = vmax.f32 %v3198_v36, %v3199_v6  ;;  %v3206_v38 = vrot.slane %v3205_v48, 2  ;;  %v3213_v23 = vrot.slane %v3212_v55, 2  ;;  %v3219_v58 = vmax.f32 %v3217_v34, %v3218_v14 }
 0x2f9   : > { %v3172_v5 = vmax.f32 %v3170_v32, %v3171_v33  ;;  %v3177_v51 = vmax.f32 %v3175_v24, %v3176_v30  ;;  %v3184_v17 = vmax.f32 %v3182_v15, %v3183_v28  ;;  %v3190_v41 = vrot.slane %v3189_v46, 4 }
 0x2fa   : > { %v3201_v37 = vrot.slane %v3200_v9, 1  ;;  %v3207_v39 = vmax.f32 %v3205_v48, %v3206_v38  ;;  %v3214_v12 = vmax.f32 %v3212_v55, %v3213_v23  ;;  %v3220_v16 = vrot.slane %v3219_v58, 2 }
 0x2fb   : > { %v3173_v45 = vrot.slane %v3172_v5, 1  ;;  %v3178_v31 = vrot.slane %v3177_v51, 2  ;;  %v3185_v40 = vrot.slane %v3184_v17, 2  ;;  %v3191_v56 = vmax.f32 %v3189_v46, %v3190_v41 }
 0x2fc   : > { %v3202_v61 = vmax.f32 %v3200_v9, %v3201_v37  ;;  %v3208_v52 = vrot.slane %v3207_v39, 1  ;;  %v3215_v11 = vrot.slane %v3214_v12, 1  ;;  %v3221_v18 = vmax.f32 %v3219_v58, %v3220_v16 }
 0x2fd   : > { %v3174_v1 = vmax.f32 %v3172_v5, %v3173_v45  ;;  %v3179_v19 = vmax.f32 %v3177_v51, %v3178_v31  ;;  %v3186_v29 = vmax.f32 %v3184_v17, %v3185_v40  ;;  %v3192_v49 = vrot.slane %v3191_v56, 2 }
 0x2fe   : > { %v3209_v26 = vmax.f32 %v3207_v39, %v3208_v52  ;;  %v3216_v25 = vmax.f32 %v3214_v12, %v3215_v11  ;;  %v3222_v2 = vrot.slane %v3221_v18, 1  ;;  %v3050_v57 = vcombine.high %v5868_v20, %v5868_v20 }
 0x2ff   : > { %v3180_v54 = vrot.slane %v3179_v19, 1  ;;  %v3187_v47 = vrot.slane %v3186_v29, 1  ;;  %v3193_v60 = vmax.f32 %v3191_v56, %v3192_v49  ;;  %v5887_v8 = vsel %vm2407_vm9, %v3202_v61, %v3174_v1 }
 0x300   : > { %v3223_v42 = vmax.f32 %v3221_v18, %v3222_v2  ;;  %v3057_v53 = vrot.slane %v5868_v20, %v5244_v62  ;;  %v3064_v36 = vrot.slane %v3050_v57, %v5244_v62  ;;  %v2985_v4 = vmax.f32 %v5862_v50, 0.0 }
 0x301   : > { %v3181_v22 = vmax.f32 %v3179_v19, %v3180_v54  ;;  %v3188_v0 = vmax.f32 %v3186_v29, %v3187_v47  ;;  %v3194_v34 = vrot.slane %v3193_v60, 1  ;;  %v4601_v32 = vadd.f32 %v5864_v27, %v5843_v43 }
 0x302   : > { %v3065_v24 = vcombine.high %v3057_v53, %v3057_v53  ;;  %v3066_v15 = vcombine.high %v3064_v36, %v3064_v36  ;;  %v3252_v6 = vsel %vm3167_vm3, %v3057_v53, -inf  ;;  %v3266_v48 = vsel %vm3167_vm3, %v3064_v36, -inf }
 0x303   : > { %v3195_v55 = vmax.f32 %v3193_v60, %v3194_v34  ;;  %v5898_v14 = vsel %vm2407_vm9, %v3209_v26, %v3181_v22  ;;  %v5901_v20 = vsel %vm2407_vm9, %v3216_v25, %v3188_v0  ;;  %v3253_v50 = vrot.slane %v3252_v6, 4 }
 0x304   : > { %v3259_v33 = vsel %vm3167_vm3, %v3065_v24, -inf  ;;  %v3267_v30 = vrot.slane %v3266_v48, 4  ;;  %v3273_v28 = vsel %vm3167_vm3, %v3066_v15, -inf  ;;  %v3033_v43 = vcombine.high %v2985_v4, %v2985_v4 }
 0x305   : > { %v5906_v27 = vsel %vm2407_vm9, %v3223_v42, %v3195_v55  ;;  %v3254_v46 = vmax.f32 %v3252_v6, %v3253_v50  ;;  %v3260_v9 = vrot.slane %v3259_v33, 4  ;;  %v3274_v38 = vrot.slane %v3273_v28, 4 }
 0x306   : > { %v3268_v23 = vmax.f32 %v3266_v48, %v3267_v30  ;;  %v3040_v58 = vrot.slane %v2985_v4, %v5244_v62  ;;  %v3047_v5 = vrot.slane %v3033_v43, %v5244_v62  ;;  %v4602_v37 = vadd.f32 %v5870_v59, %v5845_v13 }
 0x307   : > { %v3255_v51 = vrot.slane %v3254_v46, 2  ;;  %v3261_v17 = vmax.f32 %v3259_v33, %v3260_v9  ;;  %v3275_v41 = vmax.f32 %v3273_v28, %v3274_v38  ;;  %v2980_v29 = vadd.f32 %v4601_v32, %v5854_v10 }
 0x308   : > { %v3269_v39 = vrot.slane %v3268_v23, 2  ;;  %v3048_v12 = vcombine.high %v3040_v58, %v3040_v58  ;;  %v3049_v16 = vcombine.high %v3047_v5, %v3047_v5  ;;  %v3224_v45 = vsel %vm3167_vm3, %v3040_v58, -inf }
 0x309   : > { %v3256_v31 = vmax.f32 %v3254_v46, %v3255_v51  ;;  %v3225_v40 = vrot.slane %v3224_v45, 4  ;;  %v3262_v56 = vrot.slane %v3261_v17, 2  ;;  %v3238_v52 = vsel %vm3167_vm3, %v3047_v5, -inf }
 0x30a   : > { %v3231_v61 = vsel %vm3167_vm3, %v3048_v12, -inf  ;;  %v3245_v11 = vsel %vm3167_vm3, %v3049_v16, -inf  ;;  %v3270_v18 = vmax.f32 %v3268_v23, %v3269_v39  ;;  %v3276_v1 = vrot.slane %v3275_v41, 2 }
 0x30b   : > { %v3226_v19 = vmax.f32 %v3224_v45, %v3225_v40  ;;  %v3257_v13 = vrot.slane %v3256_v31, 1  ;;  %v3232_v59 = vrot.slane %v3231_v61, 4  ;;  %v3239_v49 = vrot.slane %v3238_v52, 4 }
 0x30c   : > { %v3246_v26 = vrot.slane %v3245_v11, 4  ;;  %v5917_v2 = vmax.f32 %v3261_v17, %v3262_v56  ;;  %v3271_v60 = vrot.slane %v3270_v18, 1  ;;  %v5919_v42 = vmax.f32 %v3275_v41, %v3276_v1 }
 0x30d   : > { %v3227_v25 = vrot.slane %v3226_v19, 2  ;;  %v3233_v57 = vmax.f32 %v3231_v61, %v3232_v59  ;;  %v3240_v54 = vmax.f32 %v3238_v52, %v3239_v49  ;;  %v2988_v36 = vmax.f32 %v2980_v29, 0.0 }
 0x30e   : > { %v3247_v47 = vmax.f32 %v3245_v11, %v3246_v26  ;;  %v5921_v4 = vmax.f32 %v3256_v31, %v3257_v13  ;;  %v2979_v34 = vadd.f32 %v4602_v37, %v5854_v10  ;;  %v4603_v6 = vadd.f32 %v5876_v21, %v5847_v3 }
 0x30f   : > { %v3228_v53 = vmax.f32 %v3226_v19, %v3227_v25  ;;  %v3234_v22 = vrot.slane %v3233_v57, 2  ;;  %v3241_v0 = vrot.slane %v3240_v54, 2  ;;  %v3084_v24 = vcombine.high %v2988_v36, %v2988_v36 }
 0x310   : > { %v3091_v15 = vrot.slane %v2988_v36, %v5244_v62  ;;  %v3264_v48 = vrot.slane %v5917_v2, 1  ;;  %v3248_v50 = vrot.slane %v3247_v47, 2  ;;  %v2987_v33 = vmax.f32 %v2979_v34, 0.0 }
 0x311   : > { %v3229_v32 = vrot.slane %v3228_v53, 1  ;;  %v3235_v55 = vmax.f32 %v3233_v57, %v3234_v22  ;;  %v3098_v28 = vrot.slane %v3084_v24, %v5244_v62  ;;  %v3278_v9 = vrot.slane %v5919_v42, 1 }
 0x312   : > { %v3099_v43 = vcombine.high %v3091_v15, %v3091_v15  ;;  %v3308_v46 = vsel %vm3167_vm3, %v3091_v15, -inf  ;;  %v3242_v23 = vmax.f32 %v3240_v54, %v3241_v0  ;;  %v5937_v17 = vmax.f32 %v3270_v18, %v3271_v60 }
 0x313   : > { %v3230_v30 = vmax.f32 %v3228_v53, %v3229_v32  ;;  %v3236_v38 = vrot.slane %v3235_v55, 1  ;;  %v3309_v58 = vrot.slane %v3308_v46, 4  ;;  %v3100_v3 = vcombine.high %v3098_v28, %v3098_v28 }
 0x314   : > { %v3315_v21 = vsel %vm3167_vm3, %v3099_v43, -inf  ;;  %v3322_v51 = vsel %vm3167_vm3, %v3098_v28, -inf  ;;  %v3249_v37 = vmax.f32 %v3247_v47, %v3248_v50  ;;  %v3067_v31 = vcombine.high %v2987_v33, %v2987_v33 }
 0x315   : > { %v5933_v5 = vsel %vm2409_vm10, %v3230_v30, %v5887_v8  ;;  %v3237_v41 = vmax.f32 %v3235_v55, %v3236_v38  ;;  %v3310_v39 = vmax.f32 %v3308_v46, %v3309_v58  ;;  %v3316_v12 = vrot.slane %v3315_v21, 4 }
 0x316   : > { %v3323_v16 = vrot.slane %v3322_v51, 4  ;;  %v3329_v45 = vsel %vm3167_vm3, %v3100_v3, -inf  ;;  %v3074_v61 = vrot.slane %v2987_v33, %v5244_v62  ;;  %v3243_v52 = vrot.slane %v3242_v23, 1 }
 0x317   : > { %v3418_v40 = vsel %vm2409_vm10, %v3237_v41, %v5898_v14  ;;  %v3311_v8 = vrot.slane %v3310_v39, 2  ;;  %v3330_v56 = vrot.slane %v3329_v45, 4  ;;  %v3317_v11 = vmax.f32 %v3315_v21, %v3316_v12 }
 0x318   : > { %v3324_v1 = vmax.f32 %v3322_v51, %v3323_v16  ;;  %v3081_v18 = vrot.slane %v3067_v31, %v5244_v62  ;;  %v3082_v13 = vcombine.high %v3074_v61, %v3074_v61  ;;  %v3280_v59 = vsel %vm3167_vm3, %v3074_v61, -inf }
 0x319   : > { %v3312_v19 = vmax.f32 %v3310_v39, %v3311_v8  ;;  %v3331_v29 = vmax.f32 %v3329_v45, %v3330_v56  ;;  %v3318_v49 = vrot.slane %v3317_v11, 2  ;;  %v3281_v57 = vrot.slane %v3280_v59, 4 }
 0x31a   : > { %v3325_v26 = vrot.slane %v3324_v1, 2  ;;  %v3083_v25 = vcombine.high %v3081_v18, %v3081_v18  ;;  %v3287_v14 = vsel %vm3167_vm3, %v3082_v13, -inf  ;;  %v3294_v47 = vsel %vm3167_vm3, %v3081_v18, -inf }
 0x31b   : > { %v3332_v54 = vrot.slane %v3331_v29, 2  ;;  %v2982_v60 = vadd.f32 %v4603_v6, %v5854_v10  ;;  %v3250_v53 = vrot.slane %v3249_v37, 1  ;;  %v3313_v36 = vrot.slane %v3312_v19, 1 }
 0x31c   : > { %v3319_v22 = vmax.f32 %v3317_v11, %v3318_v49  ;;  %v3288_v0 = vrot.slane %v3287_v14, 4  ;;  %v3326_v34 = vmax.f32 %v3324_v1, %v3325_v26  ;;  %v3282_v32 = vmax.f32 %v3280_v59, %v3281_v57 }
 0x31d   : > { %v3295_v24 = vrot.slane %v3294_v47, 4  ;;  %v3301_v15 = vsel %vm3167_vm3, %v3083_v25, -inf  ;;  %v3265_v55 = vmax.f32 %v5917_v2, %v3264_v48  ;;  %v5951_v50 = vmax.f32 %v5919_v42, %v3278_v9 }
 0x31e   : > { %v3333_v33 = vmax.f32 %v3331_v29, %v3332_v54  ;;  %v3289_v30 = vmax.f32 %v3287_v14, %v3288_v0  ;;  %v5953_v28 = vmax.f32 %v3242_v23, %v3243_v52  ;;  %v3302_v6 = vrot.slane %v3301_v15, 4 }
 0x31f   : > { %v3296_v43 = vmax.f32 %v3294_v47, %v3295_v24  ;;  %v2990_v46 = vmax.f32 %v2982_v60, 0.0  ;;  %v3251_v38 = vmax.f32 %v3249_v37, %v3250_v53  ;;  %v5955_v58 = vmax.f32 %v3312_v19, %v3313_v36 }
 0x320   : > { %v3320_v3 = vrot.slane %v3319_v22, 1  ;;  %v3290_v21 = vrot.slane %v3289_v30, 2  ;;  %v3327_v51 = vrot.slane %v3326_v34, 1  ;;  %v3283_v41 = vrot.slane %v3282_v32, 2 }
 0x321   : > { %v3303_v39 = vmax.f32 %v3301_v15, %v3302_v6  ;;  %v3118_v12 = vcombine.high %v2990_v46, %v2990_v46  ;;  %v3334_v2 = vrot.slane %v3333_v33, 1  ;;  %v3125_v42 = vrot.slane %v2990_v46, %v5244_v62 }
 0x322   : > { %v3291_v48 = vmax.f32 %v3289_v30, %v3290_v21  ;;  %v4604_v9 = vadd.f32 %v5881_v63, %v5849_v44  ;;  %v3297_v23 = vrot.slane %v3296_v43, 2  ;;  %v3419_v37 = vsel %vm2411_vm11, %v3265_v55, %v3418_v40 }
 0x323   : > { %v3304_v16 = vrot.slane %v3303_v39, 2  ;;  %v3132_v45 = vrot.slane %v3118_v12, %v5244_v62  ;;  %v3321_v31 = vmax.f32 %v3319_v22, %v3320_v3  ;;  %v3133_v56 = vcombine.high %v3125_v42, %v3125_v42 }
 0x324   : > { %v3292_v8 = vrot.slane %v3291_v48, 1  ;;  %v3364_v61 = vsel %vm3167_vm3, %v3125_v42, -inf  ;;  %v3284_v52 = vmax.f32 %v3282_v32, %v3283_v41  ;;  %v2981_v63 = vadd.f32 %v4604_v9, %v5854_v10 }
 0x325   : > { %v3305_v11 = vmax.f32 %v3303_v39, %v3304_v16  ;;  %v3134_v1 = vcombine.high %v3132_v45, %v3132_v45  ;;  %v3365_v18 = vrot.slane %v3364_v61, 4  ;;  %v3371_v29 = vsel %vm3167_vm3, %v3133_v56, -inf }
 0x326   : > { %v3293_v19 = vmax.f32 %v3291_v48, %v3292_v8  ;;  %v3378_v44 = vsel %vm3167_vm3, %v3132_v45, -inf  ;;  %v5966_v13 = vmax.f32 %v3326_v34, %v3327_v51  ;;  %v3298_v59 = vmax.f32 %v3296_v43, %v3297_v23 }
 0x327   : > { %v3366_v40 = vmax.f32 %v3364_v61, %v3365_v18  ;;  %v3372_v49 = vrot.slane %v3371_v29, 4  ;;  %v3379_v26 = vrot.slane %v3378_v44, 4  ;;  %v3385_v25 = vsel %vm3167_vm3, %v3134_v1, -inf }
 0x328   : > { %v2989_v57 = vmax.f32 %v2981_v63, 0.0  ;;  %v3420_v54 = vsel %vm2413_vm12, %v3293_v19, %v3419_v37  ;;  %v3285_v14 = vrot.slane %v3284_v52, 1  ;;  %v3306_v47 = vrot.slane %v3305_v11, 1 }
 0x329   : > { %v3373_v60 = vmax.f32 %v3371_v29, %v3372_v49  ;;  %v3386_v53 = vrot.slane %v3385_v25, 4  ;;  %v3380_v36 = vmax.f32 %v3378_v44, %v3379_v26  ;;  %v5972_v10 = vsel %vm2415_vm13, %v3321_v31, %v3420_v54 }
 0x32a   : > { %v3101_v22 = vcombine.high %v2989_v57, %v2989_v57  ;;  %v3108_v0 = vrot.slane %v2989_v57, %v5244_v62  ;;  %v3335_v34 = vmax.f32 %v3333_v33, %v3334_v2  ;;  %v3299_v32 = vrot.slane %v3298_v59, 1 }
 0x32b   : > { %v3367_v24 = vrot.slane %v3366_v40, 2  ;;  %v3699_v15 = vsel %vm2409_vm10, %v3251_v38, %v5906_v27  ;;  %v3387_v55 = vmax.f32 %v3385_v25, %v3386_v53  ;;  %v3286_v46 = vmax.f32 %v3284_v52, %v3285_v14  ;;  %v3393_v53 = vld [vmem:[%s6148_s5 + $0x8] sm:$0xff] }
 0x32c   : > { %v3115_v30 = vrot.slane %v3101_v22, %v5244_v62  ;;  %v3116_v43 = vcombine.high %v3108_v0, %v3108_v0  ;;  %v3336_v6 = vsel %vm3167_vm3, %v3108_v0, -inf  ;;  %v3307_v3 = vmax.f32 %v3305_v11, %v3306_v47 }
 0x32d   : > { %v3374_v21 = vrot.slane %v3373_v60, 2  ;;  %v3337_v51 = vrot.slane %v3336_v6, 4  ;;  %v3381_v41 = vrot.slane %v3380_v36, 2  ;;  %v3300_v2 = vmax.f32 %v3298_v59, %v3299_v32 }
 0x32e   : > { %v3117_v39 = vcombine.high %v3115_v30, %v3115_v30  ;;  %v3343_v12 = vsel %vm3167_vm3, %v3116_v43, -inf  ;;  %v3350_v33 = vsel %vm3167_vm3, %v3115_v30, -inf  ;;  %v3368_v48 = vmax.f32 %v3366_v40, %v3367_v24 }
 0x32f   : > { %v3338_v42 = vmax.f32 %v3336_v6, %v3337_v51  ;;  %v3344_v27 = vrot.slane %v3343_v12, 4  ;;  %v3388_v38 = vrot.slane %v3387_v55, 2  ;;  %v3351_v9 = vrot.slane %v3350_v33, 4 }
 0x330   : > { %v3357_v62 = vsel %vm3167_vm3, %v3117_v39, -inf  ;;  %v3700_v23 = vsel %vm2411_vm11, %v5951_v50, %v3699_v15  ;;  %v3375_v16 = vmax.f32 %v3373_v60, %v3374_v21  ;;  %v3382_v8 = vmax.f32 %v3380_v36, %v3381_v41  ;;  %v3392_v60 = vld [vmem:[%s6148_s5] sm:$0xff] }
 0x331   : > { %v3339_v45 = vrot.slane %v3338_v42, 2  ;;  %v3345_v37 = vmax.f32 %v3343_v12, %v3344_v27  ;;  %v3358_v31 = vrot.slane %v3357_v62, 4  ;;  %v3352_v56 = vmax.f32 %v3350_v33, %v3351_v9  ;;  %v3398_v27 = vld [vmem:[%s6148_s5 + $0x30] sm:$0xff] }
 0x332   : > { %vm3424_vm9 = vcmask 523264   ;;  %v3701_v61 = vsel %vm2413_vm12, %v3307_v3, %v3700_v23  ;;  %v3507_v52 = vsel %vm2411_vm11, %v5921_v4, %v5933_v5  ;;  %v3369_v29 = vrot.slane %v3368_v48, 1  ;;  %v3395_v3 = vld [vmem:[%s6148_s5 + $0x18] sm:$0xff]  ;;  %v4057_v23 = vld [vmem:[%s6148_s5 + $0x88] sm:$0xff] }
 0x333   : > { %v3340_v11 = vmax.f32 %v3338_v42, %v3339_v45  ;;  %v3346_v1 = vrot.slane %v3345_v37, 2  ;;  %v3359_v18 = vmax.f32 %v3357_v62, %v3358_v31  ;;  %v3702_v19 = vsel %vm2415_vm13, %v3335_v34, %v3701_v61  ;;  %v4056_v62 = vld [vmem:[%s6148_s5 + $0x80] sm:$0xff]  ;;  %v4058_v45 = vld [vmem:[%s6148_s5 + $0x90] sm:$0xff] }
 0x334   : > { %v3389_v50 = vmax.f32 %v3387_v55, %v3388_v38  ;;  %v3353_v44 = vrot.slane %v3352_v56, 2  ;;  %v3508_v63 = vsel %vm2413_vm12, %v3286_v46, %v3507_v52  ;;  %v3376_v25 = vrot.slane %v3375_v16, 1  ;;  %v3394_v46 = vld [vmem:[%s6148_s5 + $0x10] sm:$0xff]  ;;  %v3399_v38 = vld [vmem:[%s6148_s5 + $0x38] sm:$0xff] }
 0x335   : > { %v3341_v59 = vrot.slane %v3340_v11, 1  ;;  %v3347_v40 = vmax.f32 %v3345_v37, %v3346_v1  ;;  %v3360_v49 = vrot.slane %v3359_v18, 2  ;;  %v3509_v26 = vsel %vm2415_vm13, %v5955_v58, %v3508_v63  ;;  %v4059_v37 = vld [vmem:[%s6148_s5 + $0x98] sm:$0xff]  ;;  %v4062_v52 = vld [vmem:[%s6148_s5 + $0xb0] sm:$0xff] }
 0x336   : > { %v3354_v57 = vmax.f32 %v3352_v56, %v3353_v44  ;;  %v3383_v54 = vrot.slane %v3382_v8, 1  ;;  %v3602_v4 = vsel %vm2409_vm10, %v5953_v28, %v5901_v20  ;;  %v3390_v22 = vrot.slane %v3389_v50, 1  ;;  %v4061_v56 = vld [vmem:[%s6148_s5 + $0xa8] sm:$0xff]  ;;  %v3790_v44 = vld [vmem:[%s6150_s7 + $0x18] sm:$0xff] }
 0x337   : > { %v3342_v5 = vmax.f32 %v3340_v11, %v3341_v59  ;;  %v3348_v14 = vrot.slane %v3347_v40, 1  ;;  %v3361_v47 = vmax.f32 %v3359_v18, %v3360_v49  ;;  %v3603_v58 = vsel %vm2411_vm11, %v5937_v17, %v3602_v4  ;;  %v4063_v11 = vld [vmem:[%s6148_s5 + $0xb8] sm:$0xff]  ;;  %v3787_v18 = vld [vmem:[%s6150_s7] sm:$0xff]  ;;  %v3792_v59 = vld [vmem:[%s6150_s7 + $0x28] sm:$0xff] }
 0x338   : > { %v3355_v36 = vrot.slane %v3354_v57, 1  ;;  %v3370_v0 = vmax.f32 %v3368_v48, %v3369_v29  ;;  %v3604_v34 = vsel %vm2413_vm12, %v3300_v2, %v3603_v58  ;;  %v3377_v15 = vmax.f32 %v3375_v16, %v3376_v25  ;;  %v3396_v2 = vld [vmem:[%s6148_s5 + $0x20] sm:$0xff]  ;;  %v3397_v48 = vld [vmem:[%s6148_s5 + $0x28] sm:$0xff]  ;;  %v3789_v29 = vld [vmem:[%s6150_s7 + $0x10] sm:$0xff] }
 0x339   : > { %v3349_v20 = vmax.f32 %v3347_v40, %v3348_v14  ;;  %v3362_v28 = vrot.slane %v3361_v47, 1  ;;  %v3510_v32 = vsel %vm2417_vm14, %v3342_v5, %v3509_v26  ;;  %v3605_v24 = vsel %vm2415_vm13, %v5966_v13, %v3604_v34  ;;  %v3793_v40 = vld [vmem:[%s6150_s7 + $0x30] sm:$0xff]  ;;  %v3794_v26 = vld [vmem:[%s6150_s7 + $0x38] sm:$0xff] }
 0x33a   : > { %v4532_v55 = vpack.c.bf16 %v3393_v53, %v3392_v60  ;;  %v3511_v30 = vsel %vm2419_vm15, %v3370_v0, %v3510_v32  ;;  %v3356_v43 = vmax.f32 %v3354_v57, %v3355_v36  ;;  %v3384_v21 = vmax.f32 %v3382_v8, %v3383_v54  ;;  %v4060_v8 = vld [vmem:[%s6148_s5 + $0xa0] sm:$0xff]  ;;  %v3796_v54 = vld [vmem:[%s6150_s7 + $0x48] sm:$0xff]  ;;  %v3797_v5 = vld [vmem:[%s6150_s7 + $0x50] sm:$0xff] }
 0x33b   : > { %v3422_v17 = vsel %vm2417_vm14, %v3349_v20, %v5972_v10  ;;  %v3363_v6 = vmax.f32 %v3361_v47, %v3362_v28  ;;  %v3391_v51 = vmax.f32 %v3389_v50, %v3390_v22  ;;  %v4535_v33 = vpack.c.bf16 %v3395_v3, %v3394_v46  ;;  %v3795_v57 = vld [vmem:[%s6150_s7 + $0x40] sm:$0xff]  ;;  %v3798_v14 = vld [vmem:[%s6150_s7 + $0x58] sm:$0xff]  ;;  %v3800_v53 = vld [vmem:[%s6150_s7 + $0x68] sm:$0xff] }
 0x33c   : > { %v3423_v13 = vsel %vm2419_vm15, %v3377_v15, %v3422_v17  ;;  %v3606_v41 = vsel %vm2417_vm14, %v3356_v43, %v3605_v24  ;;  %v4538_v42 = vpack.c.bf16 %v3397_v48, %v3396_v2  ;;  %v4541_v9 = vpack.c.bf16 %v3399_v38, %v3398_v27  ;;  %v3799_v60 = vld [vmem:[%s6150_s7 + $0x60] sm:$0xff]  ;;  %v3801_v36 = vld [vmem:[%s6150_s7 + $0x70] sm:$0xff]  ;;  %v3802_v22 = vld [vmem:[%s6150_s7 + $0x78] sm:$0xff] }
 0x33d   : > { %4383 = vmatmul.mubr.msk.f32.vlgmr.msra.gmra.mrb[12].mxu1 %vm3424_vm9, %v3423_v13  ;;  %v3703_v39 = vsel %vm2417_vm14, %v3363_v6, %v3702_v19  ;;  %v3607_v10 = vsel %vm2419_vm15, %v3384_v21, %v3606_v41  ;;  %v4544_v16 = vpack.c.bf16 %v4057_v23, %v4056_v62  ;;  %v4547_v31 = vpack.c.bf16 %v4059_v37, %v4058_v45  ;;  %v3788_v19 = vld [vmem:[%s6150_s7 + $0x8] sm:$0xff]  ;;  %v4074_v17 = vld [vmem:[%s6149_s6] ss:$0 sm:$0xff] }
 0x33e   : > { %4533 = vmatpush3.bf16.msra.mxu1 %v4532_v55  ;;  %v3704_v12 = vsel %vm2419_vm15, %v3391_v51, %v3703_v39  ;;  %4401 = vmatprep.mubr.msk.f32.mxu1 %vm4756_vm0, %v4757_v7  ;;  %v4550_v61 = vpack.c.bf16 %v4061_v56, %v4060_v8  ;;  %v4553_v1 = vpack.c.bf16 %v4063_v11, %v4062_v52  ;;  %v4075_v21 = vld [vmem:[%s6151_s8] ss:$0 sm:$0xff] }
 0x33f   : > { %4440 = vmatmul.mubr.msk.f32.vlgmr.msra.gmra.mrb[24].mxu0 %vm3424_vm9, %v3704_v12  ;;  %4534 = vmatprep.subr.bf16.mxu1 %v4755_v35  ;;  %v4568_v50 = vpack.c.bf16 %v3788_v19, %v3787_v18  ;;  %v4571_v63 = vpack.c.bf16 %v3790_v44, %v3789_v29  ;;  %v4577_v25 = vpack.c.bf16 %v3794_v26, %v3793_v40 }
 0x340   : > { %v4580_v4 = vpack.c.bf16 %v3796_v54, %v3795_v57  ;;  %v4583_v47 = vpack.c.bf16 %v3798_v14, %v3797_v5  ;;  %v4586_v58 = vpack.c.bf16 %v3800_v53, %v3799_v60  ;;  %v4589_v0 = vpack.c.bf16 %v3802_v22, %v3801_v36 }
 0x342   : > { %4536 = vmatpush3.bf16.msra.mxu1 %v4535_v33 }
 0x343   : > { %4537 = vmatprep.subr.bf16.mxu1 %v4755_v35 }
 0x346   : > { %4539 = vmatpush3.bf16.msra.mxu1 %v4538_v42 }
 0x347   : > { %4540 = vmatprep.subr.bf16.mxu1 %v4755_v35 }
 0x34a   : > { %4542 = vmatpush3.bf16.msra.mxu1 %v4541_v9 }
 0x34b   : > { %4543 = vmatprep.subr.bf16.mxu1 %v4755_v35 }
 0x34d   : > { %4402 = vmatmul.mubr.msk.f32.vlgmr.msra.gmra.mrb[14].mxu1 %vm3424_vm9, %v3511_v30 }
 0x34e   : > { %4545 = vmatpush3.bf16.msra.mxu1 %v4544_v16  ;;  %4420 = vmatprep.mubr.msk.f32.mxu1 %vm4756_vm0, %v4757_v7 }
 0x34f   : > { %4546 = vmatprep.subr.bf16.mxu1 %v4755_v35 }
 0x352   : > { %4548 = vmatpush3.bf16.msra.mxu1 %v4547_v31 }
 0x353   : > { %4549 = vmatprep.subr.bf16.mxu1 %v4755_v35 }
 0x356   : > { %4551 = vmatpush3.bf16.msra.mxu1 %v4550_v61 }
 0x357   : > { %4552 = vmatprep.subr.bf16.mxu1 %v4755_v35 }
 0x35a   : > { %4554 = vmatpush3.bf16.msra.mxu1 %v4553_v1 }
 0x35b   : > { %4567 = vmatprep.subr.bf16.mxu1 %v4755_v35 }
 0x35d   : > { %4421 = vmatmul.mubr.msk.f32.vlgmr.msra.gmra.mrb[16].mxu1 %vm3424_vm9, %v3607_v10 }
 0x35e   : > { %4474 = vmatprep.mubr.msk.f32.mxu1 %vm4756_vm0, %v4757_v7  ;;  %4569 = vmatpush3.bf16.msra.mxu1 %v4568_v50  ;;  %v3791_v7 = vld [vmem:[%s6150_s7 + $0x20] sm:$0xff] }
 0x35f   : > { %4570 = vmatprep.subr.bf16.mxu1 %v4755_v35  ;;  %v4574_v49 = vpack.c.bf16 %v3792_v59, %v3791_v7 }
 0x362   : > { %4572 = vmatpush3.bf16.msra.mxu1 %v4571_v63 }
 0x363   : > { %4573 = vmatprep.subr.bf16.mxu1 %v4755_v35 }
 0x366   : > { %4575 = vmatpush3.bf16.msra.mxu1 %v4574_v49 }
 0x367   : > { %4576 = vmatprep.subr.bf16.mxu1 %v4755_v35 }
 0x36a   : > { %4578 = vmatpush3.bf16.msra.mxu1 %v4577_v25 }
 0x36b   : > { %4579 = vmatprep.subr.bf16.mxu1 %v4755_v35 }
 0x36e   : > { %4581 = vmatpush3.bf16.msra.mxu1 %v4580_v4 }
 0x36f   : > { %4582 = vmatprep.subr.bf16.mxu1 %v4755_v35 }
 0x372   : > { %4584 = vmatpush3.bf16.msra.mxu1 %v4583_v47 }
 0x373   : > { %4585 = vmatprep.subr.bf16.mxu1 %v4755_v35 }
 0x376   : > { %4587 = vmatpush3.bf16.msra.mxu1 %v4586_v58 }
 0x377   : > { %4588 = vmatprep.subr.bf16.mxu1 %v4755_v35 }
 0x37a   : > { %4590 = vmatpush3.bf16.msra.mxu1 %v4589_v0 }
 0x410   : > { %v3493_v34 = vpop.f32.mrb[12].mxu1 }
 0x411   : > { %v4384_v20 = vpop.f32.mrb[13].mxu1 }
 0x412   : > { %v3773_v28 = vpop.f32.mrb[24].mxu0 }
 0x413   : > { %v4441_v32 = vpop.f32.mrb[25].mxu0 }
 0x420   : > { %v3580_v24 = vpop.f32.mrb[14].mxu1 }
 0x421   : > { %v3581_v15 = vadd.f32 %v3580_v24, %v3493_v34  ;;  %v4403_v55 = vpop.f32.mrb[15].mxu1 }
 0x430   : > { %v3676_v35 = vpop.f32.mrb[16].mxu1 }
 0x431   : > { %v3680_v30 = vadd.f32 %v3676_v35, %v3581_v15  ;;  %v4422_v43 = vpop.f32.mrb[17].mxu1 }
 0x433   : > { %v3777_v6 = vadd.f32 %v3773_v28, %v3680_v30 }
 0x435   : > { %v3785_v46 = vadd.f32 %v4074_v17, %v3777_v6 }
 0x437   : > { %v3786_v3 = vmax.f32 %v3785_v46, 0.0 }
 0x439   : > { %4475 = vmatmul.mubr.f32.vlgmr.msra.gmra.mrb[18].mxu1 %v3786_v3 }
 0x50c   : > { %v3876_v13 = vpop.f32.mrb[18].mxu1 }
 0x50d   : > { %v3877_v51 = vadd.f32 %v4075_v21, %v3876_v13  ;;  %v4476_v41 = vpop.f32.mrb[19].mxu1 }
 0x50f   : > { %3880 = vst [vmem:[%s365_s21] sm:$0xff] %v3877_v51 }
 0x510 PF: > { %s21_s30 = sadd.s32 1, %s4747_s30  }
 0x511   : > { %p18_p10 = scmp.ge.s32.totalorder %s21_s30, 4  }
 0x513   :  { %20 = sbr.rel (!%p18_p10) target bundleno = 2 (0x2), region = 102 }
 0x51a   :  { %3900 = vsyncpa [#allocation3], 1 }
 0x51b   :  { %3902 = vsyncpa [#allocation3 + $0x1], 1 }
 0x51c   :  { %3903 = vsyncpa [#allocation5], 1 }

</bundles_post_ra>
